<compile_context>
chip_gen: v7x
topology: tpu7x:2x2x1
jax: 0.10.0
libtpu: 0.0.40
codegen_flags: <defaults>
</compile_context>

<pallas_src>
import functools

import jax
import jax.numpy as jnp
from jax import lax
from jax.experimental import pallas as pl
from jax.experimental.pallas import tpu as pltpu

EPS = 1e-5
LANE = 128


def _round_up(x, m):
    return (x + m - 1) // m * m


# ---------------------------------------------------------------------------
# Pallas kernels
#   Both kernels compute a "valid" kp x kp stride-1 conv as kp*kp accumulated
#   MXU matmuls over shifted slices of a VMEM-resident NHWC block, then apply
#   the folded BatchNorm scale/bias (+ fused shortcut) (+ ReLU).
# ---------------------------------------------------------------------------
def _conv_bn_kernel(x_ref, w_ref, s_ref, b_ref, o_ref, *, kp, ho, wo, relu):
    ck = x_ref.shape[-1]
    coutp = o_ref.shape[-1]
    x = x_ref[0]                                     # (ho+kp-1, wo+kp-1, ck)
    acc = jnp.zeros((ho * wo, coutp), jnp.float32)
    for di in range(kp):                             # static unroll (<= 9 taps)
        for dj in range(kp):
            slab = x[di:di + ho, dj:dj + wo, :].reshape(ho * wo, ck)
            acc = acc + jnp.dot(slab, w_ref[di, dj],
                                preferred_element_type=jnp.float32)
    y = acc * s_ref[...] + b_ref[...]
    if relu:
        y = jnp.maximum(y, 0.0)
    o_ref[0] = y.astype(o_ref.dtype)


def _conv_bn_shortcut_relu_kernel(x_ref, w_ref, s_ref, b_ref,
                                  xs_ref, ws_ref, ss_ref, bs_ref, o_ref,
                                  *, kp, ho, wo):
    """conv2 + BN2 fused with the (1x1-conv+BN or identity) shortcut + add + ReLU."""
    ck = x_ref.shape[-1]
    coutp = o_ref.shape[-1]
    x = x_ref[0]
    acc = jnp.zeros((ho * wo, coutp), jnp.float32)
    for di in range(kp):
        for dj in range(kp):
            slab = x[di:di + ho, dj:dj + wo, :].reshape(ho * wo, ck)
            acc = acc + jnp.dot(slab, w_ref[di, dj],
                                preferred_element_type=jnp.float32)
    # shortcut branch: one 1x1 matmul (identity shortcut uses an eye weight)
    sc = jnp.dot(xs_ref[0], ws_ref[0, 0], preferred_element_type=jnp.float32)
    y = acc * s_ref[...] + b_ref[...] + sc * ss_ref[...] + bs_ref[...]
    o_ref[0] = jnp.maximum(y, 0.0).astype(o_ref.dtype)


# ---------------------------------------------------------------------------
# pallas_call wrapper: grid over batch, whole (padded) image per step
# ---------------------------------------------------------------------------
def _fused_conv_call(x_in, w_eff, scale, bias, shortcut, *, kp, ho, wo, relu,
                     out_dtype):
    n, hi, wi, ck = x_in.shape
    coutp = w_eff.shape[-1]
    m = ho * wo
    assert hi == ho + kp - 1 and wi == wo + kp - 1

    # Block shapes: last two dims always equal the full array dims -> legal
    # regardless of (8,128) divisibility; output lane dim is 128-dense.
    x_spec = pl.BlockSpec((1, hi, wi, ck), lambda i: (i, 0, 0, 0))
    w_spec = pl.BlockSpec(tuple(w_eff.shape), lambda i: (0, 0, 0, 0))
    v_spec = pl.BlockSpec((1, coutp), lambda i: (0, 0))
    o_spec = pl.BlockSpec((1, m, coutp), lambda i: (i, 0, 0))

    # Rough per-step VMEM budget (double-buffered I/O + weights + f32 acc).
    blk_bytes = (2 * hi * wi * ck * x_in.dtype.itemsize
                 + w_eff.size * w_eff.dtype.itemsize
                 + 2 * m * coutp * jnp.dtype(out_dtype).itemsize
                 + 2 * m * coutp * 4)

    if shortcut is None:
        kernel = functools.partial(_conv_bn_kernel, kp=kp, ho=ho, wo=wo,
                                   relu=relu)
        in_specs = [x_spec, w_spec, v_spec, v_spec]
        args = (x_in, w_eff, scale, bias)
    else:
        xs, ws, ss, bs = shortcut
        assert xs.shape[0] == n and xs.shape[1] == m   # spatial dims must match
        xs_spec = pl.BlockSpec((1, m, xs.shape[-1]), lambda i: (i, 0, 0))
        ws_spec = pl.BlockSpec(tuple(ws.shape), lambda i: (0, 0, 0, 0))
        kernel = functools.partial(_conv_bn_shortcut_relu_kernel,
                                   kp=kp, ho=ho, wo=wo)
        in_specs = [x_spec, w_spec, v_spec, v_spec,
                    xs_spec, ws_spec, v_spec, v_spec]
        args = (x_in, w_eff, scale, bias, xs, ws, ss, bs)
        blk_bytes += (2 * m * xs.shape[-1] * xs.dtype.itemsize
                      + ws.size * ws.dtype.itemsize)

    # Explicit limit so real ResNet channel counts don't hit the default scoped
    # VMEM limit (16 MiB v5e / 32 MiB v6e,v7x); capped well under v7x's 64 MiB.
    vmem_limit = int(min(56 * 2**20, max(24 * 2**20, 2 * blk_bytes)))

    return pl.pallas_call(
        kernel,
        out_shape=jax.ShapeDtypeStruct((n, m, coutp), out_dtype),
        grid_spec=pltpu.PrefetchScalarGridSpec(
            num_scalar_prefetch=0,
            grid=(n,),
            in_specs=in_specs,
            out_specs=o_spec),
        compiler_params=pltpu.CompilerParams(
            dimension_semantics=("parallel",),
            vmem_limit_bytes=vmem_limit),
    )(*args)


# ---------------------------------------------------------------------------
# One-time preprocessing (hoisted out of the forward pass)
# ---------------------------------------------------------------------------
def _space_to_depth2(x):
    n, h, w, c = x.shape
    x = x.reshape(n, h // 2, 2, w // 2, 2, c)
    x = jnp.transpose(x, (0, 1, 3, 2, 4, 5))
    return x.reshape(n, h // 2, w // 2, 4 * c)


def _prep_conv_input(x_nhwc, stride, pad, dtype):
    """Pad + (for stride 2) space-to-depth so the conv becomes stride-1 valid."""
    assert stride in (1, 2)
    if pad:
        x_nhwc = jnp.pad(x_nhwc, ((0, 0), (pad, pad), (pad, pad), (0, 0)))
    if stride == 2:
        assert x_nhwc.shape[1] % 2 == 0 and x_nhwc.shape[2] % 2 == 0
        x_nhwc = _space_to_depth2(x_nhwc)
    return x_nhwc.astype(dtype)


def _prep_conv_weight(w_oihw, stride, cin_pad, coutp, dtype):
    """(Cout,Cin,k,k) torch weight -> (kp,kp,Ck,CoutP) effective stride-1 weight."""
    cout, cin, k, _ = w_oihw.shape
    w = jnp.transpose(w_oihw, (2, 3, 1, 0)).astype(jnp.float32)   # (k,k,Cin,Cout)
    if stride == 2:
        # stride-2 conv == stride-1 conv over the space-to-depth input
        kp = (k + 1) // 2
        weff = jnp.zeros((kp, kp, 2, 2, cin, cout), jnp.float32)
        for eh in range(kp):
            for ph in range(2):
                di = 2 * eh + ph
                if di >= k:
                    continue
                for ew in range(kp):
                    for pw in range(2):
                        dj = 2 * ew + pw
                        if dj >= k:
                            continue
                        weff = weff.at[eh, ew, ph, pw].set(w[di, dj])
        w = weff.reshape(kp, kp, 4 * cin, cout)
    ck = w.shape[2]
    if cin_pad is None:
        cin_pad = ck
    w = jnp.pad(w, ((0, 0), (0, 0), (0, cin_pad - ck), (0, coutp - cout)))
    return w.astype(dtype)


def _fold_bn(bn, coutp):
    inv = bn["gamma"] / jnp.sqrt(bn["var"] + EPS)
    scale = inv
    bias = bn["beta"] - bn["mean"] * inv
    cout = scale.shape[0]
    scale = jnp.pad(scale, (0, coutp - cout)).reshape(1, coutp).astype(jnp.float32)
    bias = jnp.pad(bias, (0, coutp - cout)).reshape(1, coutp).astype(jnp.float32)
    return scale, bias


def prepare_block_params(params, stride, compute_dtype=jnp.bfloat16):
    """Fold BN, rearrange/pad weights, cast to compute dtype.  Done once."""
    cout = params["w1"].shape[0]
    coutp = _round_up(cout, LANE)          # lane-dense output channels

    prep = {
        "w1": _prep_conv_weight(params["w1"], stride, None, coutp, compute_dtype),
        "w2": _prep_conv_weight(params["w2"], 1, coutp, coutp, compute_dtype),
    }
    prep["s1"], prep["b1"] = _fold_bn(params["bn1"], coutp)
    prep["s2"], prep["b2"] = _fold_bn(params["bn2"], coutp)

    if "w_sc" in params:
        prep["w_sc"] = _prep_conv_weight(params["w_sc"], stride, None, coutp,
                                         compute_dtype)
        prep["s_sc"], prep["b_sc"] = _fold_bn(params["bn_sc"], coutp)
    else:
        # Identity shortcut routed through the same fused kernel via an
        # identity 1x1 "conv" (keeps a single fused conv2 kernel, no extra
        # HBM round trip for the residual).
        eye = jnp.eye(cout, dtype=compute_dtype)
        prep["w_sc"] = jnp.pad(eye, ((0, 0), (0, coutp - cout)))[None, None]
        prep["s_sc"] = jnp.pad(jnp.ones((cout,), jnp.float32),
                               (0, coutp - cout)).reshape(1, coutp)
        prep["b_sc"] = jnp.zeros((1, coutp), jnp.float32)
    return prep


# ---------------------------------------------------------------------------
# Block parameters (PyTorch-style) + forward
# ---------------------------------------------------------------------------
def init_block_params(key, in_channels, out_channels, stride):
    ks = list(jax.random.split(key, 16))

    def bn(k, c):
        k1, k2, k3, k4 = jax.random.split(k, 4)
        return dict(
            gamma=jax.random.uniform(k1, (c,), jnp.float32, 0.5, 1.5),
            beta=jax.random.normal(k2, (c,), jnp.float32) * 0.1,
            mean=jax.random.normal(k3, (c,), jnp.float32) * 0.1,
            var=jax.random.uniform(k4, (c,), jnp.float32, 0.5, 1.5),
        )

    params = dict(
        w1=jax.random.normal(ks[0], (out_channels, in_channels, 3, 3),
                             jnp.float32) * 0.1,
        bn1=bn(ks[1], out_channels),
        w2=jax.random.normal(ks[2], (out_channels, out_channels, 3, 3),
                             jnp.float32) * 0.1,
        bn2=bn(ks[3], out_channels),
    )
    if stride != 1 or in_channels != out_channels:
        params["w_sc"] = jax.random.normal(
            ks[4], (out_channels, in_channels, 1, 1), jnp.float32) * 0.1
        params["bn_sc"] = bn(ks[5], out_channels)
    return params


def block_forward(prep, x_nchw, *, stride, out_channels):
    n, _, h, w = x_nchw.shape
    assert h % stride == 0 and w % stride == 0
    ho, wo = h // stride, w // stride
    cdt = prep["w1"].dtype
    coutp = prep["w1"].shape[-1]
    kp1 = prep["w1"].shape[0]
    kp2 = prep["w2"].shape[0]

    x = jnp.transpose(x_nchw, (0, 2, 3, 1))            # NCHW -> NHWC (once)

    # conv1 (3x3 / stride) + bn1 + relu
    x1 = _prep_conv_input(x, stride, 1, cdt)
    out1 = _fused_conv_call(x1, prep["w1"], prep["s1"], prep["b1"], None,
                            kp=kp1, ho=ho, wo=wo, relu=True, out_dtype=cdt)

    # conv2 (3x3 / 1) + bn2 + shortcut(+bn_sc) + add + relu (one fused kernel)
    x2 = jnp.pad(out1.reshape(n, ho, wo, coutp),
                 ((0, 0), (1, 1), (1, 1), (0, 0)))
    xsc = _prep_conv_input(x, stride, 0, cdt).reshape(n, ho * wo, -1)
    out = _fused_conv_call(x2, prep["w2"], prep["s2"], prep["b2"],
                           (xsc, prep["w_sc"], prep["s_sc"], prep["b_sc"]),
                           kp=kp2, ho=ho, wo=wo, relu=True,
                           out_dtype=x_nchw.dtype)

    out = out.reshape(n, ho, wo, coutp)[:, :, :, :out_channels]
    return jnp.transpose(out, (0, 3, 1, 2))            # NHWC -> NCHW


# ---------------------------------------------------------------------------
# Pure-JAX reference (for correctness check)
# ---------------------------------------------------------------------------
def _ref_conv(x, w, stride, pad):
    return lax.conv_general_dilated(
        x, w, (stride, stride), ((pad, pad), (pad, pad)),
        dimension_numbers=("NCHW", "OIHW", "NCHW"))


def _ref_bn(x, p):
    r = lambda v: v.reshape(1, -1, 1, 1)
    return (x - r(p["mean"])) / jnp.sqrt(r(p["var"]) + EPS) * r(p["gamma"]) \
        + r(p["beta"])


def block_forward_ref(params, x, stride):
    out = jax.nn.relu(_ref_bn(_ref_conv(x, params["w1"], stride, 1),
                              params["bn1"]))
    out = _ref_bn(_ref_conv(out, params["w2"], 1, 1), params["bn2"])
    if "w_sc" in params:
        sc = _ref_bn(_ref_conv(x, params["w_sc"], stride, 0), params["bn_sc"])
    else:
        sc = x
    return jax.nn.relu(out + sc)


# ---------------------------------------------------------------------------
if __name__ == "__main__":
    key = jax.random.PRNGKey(0)

    configs = [
        # (N, C_in, C_out, HW, stride)
        (2, 4, 8, 16, 2),    # down-sampling block (1x1-conv shortcut)
        (2, 8, 8, 16, 1),    # identity-shortcut block
    ]

    for idx, (n, cin, cout, hw, stride) in enumerate(configs):
        kk = jax.random.fold_in(key, idx)
        k_x, k_p = jax.random.split(kk)
        x = jax.random.normal(k_x, (n, cin, hw, hw), jnp.float32)
        params = init_block_params(k_p, cin, cout, stride)
        ref = block_forward_ref(params, x, stride)

        fwd = jax.jit(functools.partial(block_forward, stride=stride,
                                        out_channels=cout))

        # f32 compute path: tight numerical check
        prep32 = prepare_block_params(params, stride,
                                      compute_dtype=jnp.float32)
        out32 = jax.block_until_ready(fwd(prep32, x))
        assert out32.shape == ref.shape == (n, cout, hw // stride, hw // stride)
        assert jnp.allclose(out32, ref, atol=2e-4, rtol=2e-4), \
            float(jnp.max(jnp.abs(out32 - ref)))

        # bf16 compute path (performance default): looser check
        prep16 = prepare_block_params(params, stride,
                                      compute_dtype=jnp.bfloat16)
        out16 = jax.block_until_ready(fwd(prep16, x))
        assert jnp.allclose(out16, ref, atol=1e-1, rtol=5e-2), \
            float(jnp.max(jnp.abs(out16 - ref)))

    print("KERNEL_OK")
</pallas_src>

<mosaic_0001>
module attributes {stable_mosaic.version = 11 : i64} {
  func.func @_conv_bn_kernel(%arg0: i32, %arg1: memref<1x9x9x16xf32, #tpu.memory_space<vmem>>, %arg2: memref<2x2x16x128xf32, #tpu.memory_space<vmem>>, %arg3: memref<1x128xf32, #tpu.memory_space<vmem>>, %arg4: memref<1x128xf32, #tpu.memory_space<vmem>>, %arg5: memref<1x64x128xf32, #tpu.memory_space<vmem>>) attributes {dimension_semantics = [#tpu.dimension_semantics<parallel>], iteration_bounds = array<i64: 2>, scalar_prefetch = 0 : i64, scratch_operands = 0 : i64, tpu.core_type = #tpu.core_type<tc>, window_params = [{transform_indices = @transform_0, window_bounds = array<i64: 1, 9, 9, 16>}, {pipeline_mode = #tpu.pipeline_mode<synchronous>, transform_indices = @transform_1, window_bounds = array<i64: 2, 2, 16, 128>}, {pipeline_mode = #tpu.pipeline_mode<synchronous>, transform_indices = @transform_2, window_bounds = array<i64: 1, 128>}, {pipeline_mode = #tpu.pipeline_mode<synchronous>, transform_indices = @transform_3, window_bounds = array<i64: 1, 128>}, {transform_indices = @transform_4, window_bounds = array<i64: 1, 64, 128>}]} {
    %c0 = arith.constant 0 : index
    %c0_0 = arith.constant 0 : index
    %c0_1 = arith.constant 0 : index
    %c0_2 = arith.constant 0 : index
    %0 = vector.load %arg1[%c0, %c0_0, %c0_1, %c0_2] : memref<1x9x9x16xf32, #tpu.memory_space<vmem>>, vector<1x9x9x16xf32>
    %1 = vector.shape_cast %0 : vector<1x9x9x16xf32> to vector<9x9x16xf32>
    %cst = arith.constant 0.000000e+00 : f32
    %2 = vector.broadcast %cst : f32 to vector<64x128xf32>
    %3 = vector.extract_strided_slice %1 {offsets = [0, 0, 0], sizes = [8, 8, 16], strides = [1, 1, 1]} : vector<9x9x16xf32> to vector<8x8x16xf32>
    %4 = vector.shape_cast %3 : vector<8x8x16xf32> to vector<64x16xf32>
    %c0_3 = arith.constant 0 : index
    %c0_4 = arith.constant 0 : index
    %c0_5 = arith.constant 0 : index
    %c0_6 = arith.constant 0 : index
    %5 = vector.load %arg2[%c0_3, %c0_4, %c0_5, %c0_6] : memref<2x2x16x128xf32, #tpu.memory_space<vmem>>, vector<1x1x16x128xf32>
    %6 = vector.shape_cast %5 : vector<1x1x16x128xf32> to vector<16x128xf32>
    %cst_7 = arith.constant dense<0.000000e+00> : vector<64x128xf32>
    %7 = tpu.matmul %4, %6, %cst_7 {dimension_numbers = #tpu.dot_dimension_numbers<[1], [0], [0], [1], [0, 0, 1, 1], [], []>} : vector<64x16xf32>, vector<16x128xf32>, vector<64x128xf32> -> vector<64x128xf32>
    %8 = arith.addf %2, %7 : vector<64x128xf32>
    %9 = vector.extract_strided_slice %1 {offsets = [0, 1, 0], sizes = [8, 8, 16], strides = [1, 1, 1]} : vector<9x9x16xf32> to vector<8x8x16xf32>
    %10 = vector.shape_cast %9 : vector<8x8x16xf32> to vector<64x16xf32>
    %c0_8 = arith.constant 0 : index
    %c1 = arith.constant 1 : index
    %c0_9 = arith.constant 0 : index
    %c0_10 = arith.constant 0 : index
    %11 = vector.load %arg2[%c0_8, %c1, %c0_9, %c0_10] : memref<2x2x16x128xf32, #tpu.memory_space<vmem>>, vector<1x1x16x128xf32>
    %12 = vector.shape_cast %11 : vector<1x1x16x128xf32> to vector<16x128xf32>
    %cst_11 = arith.constant dense<0.000000e+00> : vector<64x128xf32>
    %13 = tpu.matmul %10, %12, %cst_11 {dimension_numbers = #tpu.dot_dimension_numbers<[1], [0], [0], [1], [0, 0, 1, 1], [], []>} : vector<64x16xf32>, vector<16x128xf32>, vector<64x128xf32> -> vector<64x128xf32>
    %14 = arith.addf %8, %13 : vector<64x128xf32>
    %15 = vector.extract_strided_slice %1 {offsets = [1, 0, 0], sizes = [8, 8, 16], strides = [1, 1, 1]} : vector<9x9x16xf32> to vector<8x8x16xf32>
    %16 = vector.shape_cast %15 : vector<8x8x16xf32> to vector<64x16xf32>
    %c1_12 = arith.constant 1 : index
    %c0_13 = arith.constant 0 : index
    %c0_14 = arith.constant 0 : index
    %c0_15 = arith.constant 0 : index
    %17 = vector.load %arg2[%c1_12, %c0_13, %c0_14, %c0_15] : memref<2x2x16x128xf32, #tpu.memory_space<vmem>>, vector<1x1x16x128xf32>
    %18 = vector.shape_cast %17 : vector<1x1x16x128xf32> to vector<16x128xf32>
    %cst_16 = arith.constant dense<0.000000e+00> : vector<64x128xf32>
    %19 = tpu.matmul %16, %18, %cst_16 {dimension_numbers = #tpu.dot_dimension_numbers<[1], [0], [0], [1], [0, 0, 1, 1], [], []>} : vector<64x16xf32>, vector<16x128xf32>, vector<64x128xf32> -> vector<64x128xf32>
    %20 = arith.addf %14, %19 : vector<64x128xf32>
    %21 = vector.extract_strided_slice %1 {offsets = [1, 1, 0], sizes = [8, 8, 16], strides = [1, 1, 1]} : vector<9x9x16xf32> to vector<8x8x16xf32>
    %22 = vector.shape_cast %21 : vector<8x8x16xf32> to vector<64x16xf32>
    %c1_17 = arith.constant 1 : index
    %c1_18 = arith.constant 1 : index
    %c0_19 = arith.constant 0 : index
    %c0_20 = arith.constant 0 : index
    %23 = vector.load %arg2[%c1_17, %c1_18, %c0_19, %c0_20] : memref<2x2x16x128xf32, #tpu.memory_space<vmem>>, vector<1x1x16x128xf32>
    %24 = vector.shape_cast %23 : vector<1x1x16x128xf32> to vector<16x128xf32>
    %cst_21 = arith.constant dense<0.000000e+00> : vector<64x128xf32>
    %25 = tpu.matmul %22, %24, %cst_21 {dimension_numbers = #tpu.dot_dimension_numbers<[1], [0], [0], [1], [0, 0, 1, 1], [], []>} : vector<64x16xf32>, vector<16x128xf32>, vector<64x128xf32> -> vector<64x128xf32>
    %26 = arith.addf %20, %25 : vector<64x128xf32>
    %c0_22 = arith.constant 0 : index
    %c0_23 = arith.constant 0 : index
    %27 = vector.load %arg3[%c0_22, %c0_23] : memref<1x128xf32, #tpu.memory_space<vmem>>, vector<1x128xf32>
    %28 = vector.broadcast %27 : vector<1x128xf32> to vector<64x128xf32>
    %29 = arith.mulf %26, %28 : vector<64x128xf32>
    %c0_24 = arith.constant 0 : index
    %c0_25 = arith.constant 0 : index
    %30 = vector.load %arg4[%c0_24, %c0_25] : memref<1x128xf32, #tpu.memory_space<vmem>>, vector<1x128xf32>
    %31 = vector.broadcast %30 : vector<1x128xf32> to vector<64x128xf32>
    %32 = arith.addf %29, %31 : vector<64x128xf32>
    %cst_26 = arith.constant 0.000000e+00 : f32
    %33 = vector.broadcast %cst_26 : f32 to vector<64x128xf32>
    %34 = arith.maximumf %32, %33 : vector<64x128xf32>
    %c0_27 = arith.constant 0 : index
    %c0_28 = arith.constant 0 : index
    %c0_29 = arith.constant 0 : index
    %35 = vector.load %arg5[%c0_27, %c0_28, %c0_29] : memref<1x64x128xf32, #tpu.memory_space<vmem>>, vector<1x64x128xf32>
    %36 = vector.shape_cast %35 : vector<1x64x128xf32> to vector<64x128xf32>
    %37 = vector.shape_cast %34 : vector<64x128xf32> to vector<1x64x128xf32>
    tpu.vector_store %arg5[%c0_27, %c0_28, %c0_29], %37 {strides = array<i32>} : memref<1x64x128xf32, #tpu.memory_space<vmem>>, vector<1x64x128xf32>,
    return
  }
  func.func @transform_0(%arg0: i32) -> (i32, i32, i32, i32) {
    %c0_i32 = arith.constant 0 : i32
    %c0_i32_0 = arith.constant 0 : i32
    %c0_i32_1 = arith.constant 0 : i32
    %c0_i32_2 = arith.constant 0 : i32
    return %arg0, %c0_i32, %c0_i32_0, %c0_i32_1 : i32, i32, i32, i32
  }
  func.func @transform_1(%arg0: i32) -> (i32, i32, i32, i32) {
    %c0_i32 = arith.constant 0 : i32
    %c0_i32_0 = arith.constant 0 : i32
    %c0_i32_1 = arith.constant 0 : i32
    %c0_i32_2 = arith.constant 0 : i32
    %c0_i32_3 = arith.constant 0 : i32
    return %c0_i32, %c0_i32_0, %c0_i32_1, %c0_i32_2 : i32, i32, i32, i32
  }
  func.func @transform_2(%arg0: i32) -> (i32, i32) {
    %c0_i32 = arith.constant 0 : i32
    %c0_i32_0 = arith.constant 0 : i32
    %c0_i32_1 = arith.constant 0 : i32
    return %c0_i32, %c0_i32_0 : i32, i32
  }
  func.func @transform_3(%arg0: i32) -> (i32, i32) {
    %c0_i32 = arith.constant 0 : i32
    %c0_i32_0 = arith.constant 0 : i32
    %c0_i32_1 = arith.constant 0 : i32
    return %c0_i32, %c0_i32_0 : i32, i32
  }
  func.func @transform_4(%arg0: i32) -> (i32, i32, i32) {
    %c0_i32 = arith.constant 0 : i32
    %c0_i32_0 = arith.constant 0 : i32
    %c0_i32_1 = arith.constant 0 : i32
    return %arg0, %c0_i32, %c0_i32_0 : i32, i32, i32
  }
}

module attributes {stable_mosaic.version = 11 : i64} {
  func.func @_conv_bn_shortcut_relu_kernel(%arg0: i32, %arg1: memref<1x10x10x128xf32, #tpu.memory_space<vmem>>, %arg2: memref<3x3x128x128xf32, #tpu.memory_space<vmem>>, %arg3: memref<1x128xf32, #tpu.memory_space<vmem>>, %arg4: memref<1x128xf32, #tpu.memory_space<vmem>>, %arg5: memref<1x64x16xf32, #tpu.memory_space<vmem>>, %arg6: memref<1x1x16x128xf32, #tpu.memory_space<vmem>>, %arg7: memref<1x128xf32, #tpu.memory_space<vmem>>, %arg8: memref<1x128xf32, #tpu.memory_space<vmem>>, %arg9: memref<1x64x128xf32, #tpu.memory_space<vmem>>) attributes {dimension_semantics = [#tpu.dimension_semantics<parallel>], iteration_bounds = array<i64: 2>, scalar_prefetch = 0 : i64, scratch_operands = 0 : i64, tpu.core_type = #tpu.core_type<tc>, window_params = [{transform_indices = @transform_0, window_bounds = array<i64: 1, 10, 10, 128>}, {pipeline_mode = #tpu.pipeline_mode<synchronous>, transform_indices = @transform_1, window_bounds = array<i64: 3, 3, 128, 128>}, {pipeline_mode = #tpu.pipeline_mode<synchronous>, transform_indices = @transform_2, window_bounds = array<i64: 1, 128>}, {pipeline_mode = #tpu.pipeline_mode<synchronous>, transform_indices = @transform_3, window_bounds = array<i64: 1, 128>}, {transform_indices = @transform_4, window_bounds = array<i64: 1, 64, 16>}, {pipeline_mode = #tpu.pipeline_mode<synchronous>, transform_indices = @transform_5, window_bounds = array<i64: 1, 1, 16, 128>}, {pipeline_mode = #tpu.pipeline_mode<synchronous>, transform_indices = @transform_6, window_bounds = array<i64: 1, 128>}, {pipeline_mode = #tpu.pipeline_mode<synchronous>, transform_indices = @transform_7, window_bounds = array<i64: 1, 128>}, {transform_indices = @transform_8, window_bounds = array<i64: 1, 64, 128>}]} {
    %c0 = arith.constant 0 : index
    %c0_0 = arith.constant 0 : index
    %c0_1 = arith.constant 0 : index
    %c0_2 = arith.constant 0 : index
    %0 = vector.load %arg1[%c0, %c0_0, %c0_1, %c0_2] : memref<1x10x10x128xf32, #tpu.memory_space<vmem>>, vector<1x10x10x128xf32>
    %1 = vector.shape_cast %0 : vector<1x10x10x128xf32> to vector<10x10x128xf32>
    %cst = arith.constant 0.000000e+00 : f32
    %2 = vector.broadcast %cst : f32 to vector<64x128xf32>
    %3 = vector.extract_strided_slice %1 {offsets = [0, 0, 0], sizes = [8, 8, 128], strides = [1, 1, 1]} : vector<10x10x128xf32> to vector<8x8x128xf32>
    %4 = vector.shape_cast %3 : vector<8x8x128xf32> to vector<64x128xf32>
    %c0_3 = arith.constant 0 : index
    %c0_4 = arith.constant 0 : index
    %c0_5 = arith.constant 0 : index
    %c0_6 = arith.constant 0 : index
    %5 = vector.load %arg2[%c0_3, %c0_4, %c0_5, %c0_6] : memref<3x3x128x128xf32, #tpu.memory_space<vmem>>, vector<1x1x128x128xf32>
    %6 = vector.shape_cast %5 : vector<1x1x128x128xf32> to vector<128x128xf32>
    %cst_7 = arith.constant dense<0.000000e+00> : vector<64x128xf32>
    %7 = tpu.matmul %4, %6, %cst_7 {dimension_numbers = #tpu.dot_dimension_numbers<[1], [0], [0], [1], [0, 0, 1, 1], [], []>} : vector<64x128xf32>, vector<128x128xf32>, vector<64x128xf32> -> vector<64x128xf32>
    %8 = arith.addf %2, %7 : vector<64x128xf32>
    %9 = vector.extract_strided_slice %1 {offsets = [0, 1, 0], sizes = [8, 8, 128], strides = [1, 1, 1]} : vector<10x10x128xf32> to vector<8x8x128xf32>
    %10 = vector.shape_cast %9 : vector<8x8x128xf32> to vector<64x128xf32>
    %c0_8 = arith.constant 0 : index
    %c1 = arith.constant 1 : index
    %c0_9 = arith.constant 0 : index
    %c0_10 = arith.constant 0 : index
    %11 = vector.load %arg2[%c0_8, %c1, %c0_9, %c0_10] : memref<3x3x128x128xf32, #tpu.memory_space<vmem>>, vector<1x1x128x128xf32>
    %12 = vector.shape_cast %11 : vector<1x1x128x128xf32> to vector<128x128xf32>
    %cst_11 = arith.constant dense<0.000000e+00> : vector<64x128xf32>
    %13 = tpu.matmul %10, %12, %cst_11 {dimension_numbers = #tpu.dot_dimension_numbers<[1], [0], [0], [1], [0, 0, 1, 1], [], []>} : vector<64x128xf32>, vector<128x128xf32>, vector<64x128xf32> -> vector<64x128xf32>
    %14 = arith.addf %8, %13 : vector<64x128xf32>
    %15 = vector.extract_strided_slice %1 {offsets = [0, 2, 0], sizes = [8, 8, 128], strides = [1, 1, 1]} : vector<10x10x128xf32> to vector<8x8x128xf32>
    %16 = vector.shape_cast %15 : vector<8x8x128xf32> to vector<64x128xf32>
    %c0_12 = arith.constant 0 : index
    %c2 = arith.constant 2 : index
    %c0_13 = arith.constant 0 : index
    %c0_14 = arith.constant 0 : index
    %17 = vector.load %arg2[%c0_12, %c2, %c0_13, %c0_14] : memref<3x3x128x128xf32, #tpu.memory_space<vmem>>, vector<1x1x128x128xf32>
    %18 = vector.shape_cast %17 : vector<1x1x128x128xf32> to vector<128x128xf32>
    %cst_15 = arith.constant dense<0.000000e+00> : vector<64x128xf32>
    %19 = tpu.matmul %16, %18, %cst_15 {dimension_numbers = #tpu.dot_dimension_numbers<[1], [0], [0], [1], [0, 0, 1, 1], [], []>} : vector<64x128xf32>, vector<128x128xf32>, vector<64x128xf32> -> vector<64x128xf32>
    %20 = arith.addf %14, %19 : vector<64x128xf32>
    %21 = vector.extract_strided_slice %1 {offsets = [1, 0, 0], sizes = [8, 8, 128], strides = [1, 1, 1]} : vector<10x10x128xf32> to vector<8x8x128xf32>
    %22 = vector.shape_cast %21 : vector<8x8x128xf32> to vector<64x128xf32>
    %c1_16 = arith.constant 1 : index
    %c0_17 = arith.constant 0 : index
    %c0_18 = arith.constant 0 : index
    %c0_19 = arith.constant 0 : index
    %23 = vector.load %arg2[%c1_16, %c0_17, %c0_18, %c0_19] : memref<3x3x128x128xf32, #tpu.memory_space<vmem>>, vector<1x1x128x128xf32>
    %24 = vector.shape_cast %23 : vector<1x1x128x128xf32> to vector<128x128xf32>
    %cst_20 = arith.constant dense<0.000000e+00> : vector<64x128xf32>
    %25 = tpu.matmul %22, %24, %cst_20 {dimension_numbers = #tpu.dot_dimension_numbers<[1], [0], [0], [1], [0, 0, 1, 1], [], []>} : vector<64x128xf32>, vector<128x128xf32>, vector<64x128xf32> -> vector<64x128xf32>
    %26 = arith.addf %20, %25 : vector<64x128xf32>
    %27 = vector.extract_strided_slice %1 {offsets = [1, 1, 0], sizes = [8, 8, 128], strides = [1, 1, 1]} : vector<10x10x128xf32> to vector<8x8x128xf32>
    %28 = vector.shape_cast %27 : vector<8x8x128xf32> to vector<64x128xf32>
    %c1_21 = arith.constant 1 : index
    %c1_22 = arith.constant 1 : index
    %c0_23 = arith.constant 0 : index
    %c0_24 = arith.constant 0 : index
    %29 = vector.load %arg2[%c1_21, %c1_22, %c0_23, %c0_24] : memref<3x3x128x128xf32, #tpu.memory_space<vmem>>, vector<1x1x128x128xf32>
    %30 = vector.shape_cast %29 : vector<1x1x128x128xf32> to vector<128x128xf32>
    %cst_25 = arith.constant dense<0.000000e+00> : vector<64x128xf32>
    %31 = tpu.matmul %28, %30, %cst_25 {dimension_numbers = #tpu.dot_dimension_numbers<[1], [0], [0], [1], [0, 0, 1, 1], [], []>} : vector<64x128xf32>, vector<128x128xf32>, vector<64x128xf32> -> vector<64x128xf32>
    %32 = arith.addf %26, %31 : vector<64x128xf32>
    %33 = vector.extract_strided_slice %1 {offsets = [1, 2, 0], sizes = [8, 8, 128], strides = [1, 1, 1]} : vector<10x10x128xf32> to vector<8x8x128xf32>
    %34 = vector.shape_cast %33 : vector<8x8x128xf32> to vector<64x128xf32>
    %c1_26 = arith.constant 1 : index
    %c2_27 = arith.constant 2 : index
    %c0_28 = arith.constant 0 : index
    %c0_29 = arith.constant 0 : index
    %35 = vector.load %arg2[%c1_26, %c2_27, %c0_28, %c0_29] : memref<3x3x128x128xf32, #tpu.memory_space<vmem>>, vector<1x1x128x128xf32>
    %36 = vector.shape_cast %35 : vector<1x1x128x128xf32> to vector<128x128xf32>
    %cst_30 = arith.constant dense<0.000000e+00> : vector<64x128xf32>
    %37 = tpu.matmul %34, %36, %cst_30 {dimension_numbers = #tpu.dot_dimension_numbers<[1], [0], [0], [1], [0, 0, 1, 1], [], []>} : vector<64x128xf32>, vector<128x128xf32>, vector<64x128xf32> -> vector<64x128xf32>
    %38 = arith.addf %32, %37 : vector<64x128xf32>
    %39 = vector.extract_strided_slice %1 {offsets = [2, 0, 0], sizes = [8, 8, 128], strides = [1, 1, 1]} : vector<10x10x128xf32> to vector<8x8x128xf32>
    %40 = vector.shape_cast %39 : vector<8x8x128xf32> to vector<64x128xf32>
    %c2_31 = arith.constant 2 : index
    %c0_32 = arith.constant 0 : index
    %c0_33 = arith.constant 0 : index
    %c0_34 = arith.constant 0 : index
    %41 = vector.load %arg2[%c2_31, %c0_32, %c0_33, %c0_34] : memref<3x3x128x128xf32, #tpu.memory_space<vmem>>, vector<1x1x128x128xf32>
    %42 = vector.shape_cast %41 : vector<1x1x128x128xf32> to vector<128x128xf32>
    %cst_35 = arith.constant dense<0.000000e+00> : vector<64x128xf32>
    %43 = tpu.matmul %40, %42, %cst_35 {dimension_numbers = #tpu.dot_dimension_numbers<[1], [0], [0], [1], [0, 0, 1, 1], [], []>} : vector<64x128xf32>, vector<128x128xf32>, vector<64x128xf32> -> vector<64x128xf32>
    %44 = arith.addf %38, %43 : vector<64x128xf32>
    %45 = vector.extract_strided_slice %1 {offsets = [2, 1, 0], sizes = [8, 8, 128], strides = [1, 1, 1]} : vector<10x10x128xf32> to vector<8x8x128xf32>
    %46 = vector.shape_cast %45 : vector<8x8x128xf32> to vector<64x128xf32>
    %c2_36 = arith.constant 2 : index
    %c1_37 = arith.constant 1 : index
    %c0_38 = arith.constant 0 : index
    %c0_39 = arith.constant 0 : index
    %47 = vector.load %arg2[%c2_36, %c1_37, %c0_38, %c0_39] : memref<3x3x128x128xf32, #tpu.memory_space<vmem>>, vector<1x1x128x128xf32>
    %48 = vector.shape_cast %47 : vector<1x1x128x128xf32> to vector<128x128xf32>
    %cst_40 = arith.constant dense<0.000000e+00> : vector<64x128xf32>
    %49 = tpu.matmul %46, %48, %cst_40 {dimension_numbers = #tpu.dot_dimension_numbers<[1], [0], [0], [1], [0, 0, 1, 1], [], []>} : vector<64x128xf32>, vector<128x128xf32>, vector<64x128xf32> -> vector<64x128xf32>
    %50 = arith.addf %44, %49 : vector<64x128xf32>
    %51 = vector.extract_strided_slice %1 {offsets = [2, 2, 0], sizes = [8, 8, 128], strides = [1, 1, 1]} : vector<10x10x128xf32> to vector<8x8x128xf32>
    %52 = vector.shape_cast %51 : vector<8x8x128xf32> to vector<64x128xf32>
    %c2_41 = arith.constant 2 : index
    %c2_42 = arith.constant 2 : index
    %c0_43 = arith.constant 0 : index
    %c0_44 = arith.constant 0 : index
    %53 = vector.load %arg2[%c2_41, %c2_42, %c0_43, %c0_44] : memref<3x3x128x128xf32, #tpu.memory_space<vmem>>, vector<1x1x128x128xf32>
    %54 = vector.shape_cast %53 : vector<1x1x128x128xf32> to vector<128x128xf32>
    %cst_45 = arith.constant dense<0.000000e+00> : vector<64x128xf32>
    %55 = tpu.matmul %52, %54, %cst_45 {dimension_numbers = #tpu.dot_dimension_numbers<[1], [0], [0], [1], [0, 0, 1, 1], [], []>} : vector<64x128xf32>, vector<128x128xf32>, vector<64x128xf32> -> vector<64x128xf32>
    %56 = arith.addf %50, %55 : vector<64x128xf32>
    %c0_46 = arith.constant 0 : index
    %c0_47 = arith.constant 0 : index
    %c0_48 = arith.constant 0 : index
    %57 = vector.load %arg5[%c0_46, %c0_47, %c0_48] : memref<1x64x16xf32, #tpu.memory_space<vmem>>, vector<1x64x16xf32>
    %58 = vector.shape_cast %57 : vector<1x64x16xf32> to vector<64x16xf32>
    %c0_49 = arith.constant 0 : index
    %c0_50 = arith.constant 0 : index
    %c0_51 = arith.constant 0 : index
    %c0_52 = arith.constant 0 : index
    %59 = vector.load %arg6[%c0_49, %c0_50, %c0_51, %c0_52] : memref<1x1x16x128xf32, #tpu.memory_space<vmem>>, vector<1x1x16x128xf32>
    %60 = vector.shape_cast %59 : vector<1x1x16x128xf32> to vector<16x128xf32>
    %cst_53 = arith.constant dense<0.000000e+00> : vector<64x128xf32>
    %61 = tpu.matmul %58, %60, %cst_53 {dimension_numbers = #tpu.dot_dimension_numbers<[1], [0], [0], [1], [0, 0, 1, 1], [], []>} : vector<64x16xf32>, vector<16x128xf32>, vector<64x128xf32> -> vector<64x128xf32>
    %c0_54 = arith.constant 0 : index
    %c0_55 = arith.constant 0 : index
    %62 = vector.load %arg3[%c0_54, %c0_55] : memref<1x128xf32, #tpu.memory_space<vmem>>, vector<1x128xf32>
    %63 = vector.broadcast %62 : vector<1x128xf32> to vector<64x128xf32>
    %64 = arith.mulf %56, %63 : vector<64x128xf32>
    %c0_56 = arith.constant 0 : index
    %c0_57 = arith.constant 0 : index
    %65 = vector.load %arg4[%c0_56, %c0_57] : memref<1x128xf32, #tpu.memory_space<vmem>>, vector<1x128xf32>
    %66 = vector.broadcast %65 : vector<1x128xf32> to vector<64x128xf32>
    %67 = arith.addf %64, %66 : vector<64x128xf32>
    %c0_58 = arith.constant 0 : index
    %c0_59 = arith.constant 0 : index
    %68 = vector.load %arg7[%c0_58, %c0_59] : memref<1x128xf32, #tpu.memory_space<vmem>>, vector<1x128xf32>
    %69 = vector.broadcast %68 : vector<1x128xf32> to vector<64x128xf32>
    %70 = arith.mulf %61, %69 : vector<64x128xf32>
    %71 = arith.addf %67, %70 : vector<64x128xf32>
    %c0_60 = arith.constant 0 : index
    %c0_61 = arith.constant 0 : index
    %72 = vector.load %arg8[%c0_60, %c0_61] : memref<1x128xf32, #tpu.memory_space<vmem>>, vector<1x128xf32>
    %73 = vector.broadcast %72 : vector<1x128xf32> to vector<64x128xf32>
    %74 = arith.addf %71, %73 : vector<64x128xf32>
    %cst_62 = arith.constant 0.000000e+00 : f32
    %75 = vector.broadcast %cst_62 : f32 to vector<64x128xf32>
    %76 = arith.maximumf %74, %75 : vector<64x128xf32>
    %c0_63 = arith.constant 0 : index
    %c0_64 = arith.constant 0 : index
    %c0_65 = arith.constant 0 : index
    %77 = vector.load %arg9[%c0_63, %c0_64, %c0_65] : memref<1x64x128xf32, #tpu.memory_space<vmem>>, vector<1x64x128xf32>
    %78 = vector.shape_cast %77 : vector<1x64x128xf32> to vector<64x128xf32>
    %79 = vector.shape_cast %76 : vector<64x128xf32> to vector<1x64x128xf32>
    tpu.vector_store %arg9[%c0_63, %c0_64, %c0_65], %79 {strides = array<i32>} : memref<1x64x128xf32, #tpu.memory_space<vmem>>, vector<1x64x128xf32>,
    return
  }
  func.func @transform_0(%arg0: i32) -> (i32, i32, i32, i32) {
    %c0_i32 = arith.constant 0 : i32
    %c0_i32_0 = arith.constant 0 : i32
    %c0_i32_1 = arith.constant 0 : i32
    %c0_i32_2 = arith.constant 0 : i32
    return %arg0, %c0_i32, %c0_i32_0, %c0_i32_1 : i32, i32, i32, i32
  }
  func.func @transform_1(%arg0: i32) -> (i32, i32, i32, i32) {
    %c0_i32 = arith.constant 0 : i32
    %c0_i32_0 = arith.constant 0 : i32
    %c0_i32_1 = arith.constant 0 : i32
    %c0_i32_2 = arith.constant 0 : i32
    %c0_i32_3 = arith.constant 0 : i32
    return %c0_i32, %c0_i32_0, %c0_i32_1, %c0_i32_2 : i32, i32, i32, i32
  }
  func.func @transform_2(%arg0: i32) -> (i32, i32) {
    %c0_i32 = arith.constant 0 : i32
    %c0_i32_0 = arith.constant 0 : i32
    %c0_i32_1 = arith.constant 0 : i32
    return %c0_i32, %c0_i32_0 : i32, i32
  }
  func.func @transform_3(%arg0: i32) -> (i32, i32) {
    %c0_i32 = arith.constant 0 : i32
    %c0_i32_0 = arith.constant 0 : i32
    %c0_i32_1 = arith.constant 0 : i32
    return %c0_i32, %c0_i32_0 : i32, i32
  }
  func.func @transform_4(%arg0: i32) -> (i32, i32, i32) {
    %c0_i32 = arith.constant 0 : i32
    %c0_i32_0 = arith.constant 0 : i32
    %c0_i32_1 = arith.constant 0 : i32
    return %arg0, %c0_i32, %c0_i32_0 : i32, i32, i32
  }
  func.func @transform_5(%arg0: i32) -> (i32, i32, i32, i32) {
    %c0_i32 = arith.constant 0 : i32
    %c0_i32_0 = arith.constant 0 : i32
    %c0_i32_1 = arith.constant 0 : i32
    %c0_i32_2 = arith.constant 0 : i32
    %c0_i32_3 = arith.constant 0 : i32
    return %c0_i32, %c0_i32_0, %c0_i32_1, %c0_i32_2 : i32, i32, i32, i32
  }
  func.func @transform_6(%arg0: i32) -> (i32, i32) {
    %c0_i32 = arith.constant 0 : i32
    %c0_i32_0 = arith.constant 0 : i32
    %c0_i32_1 = arith.constant 0 : i32
    return %c0_i32, %c0_i32_0 : i32, i32
  }
  func.func @transform_7(%arg0: i32) -> (i32, i32) {
    %c0_i32 = arith.constant 0 : i32
    %c0_i32_0 = arith.constant 0 : i32
    %c0_i32_1 = arith.constant 0 : i32
    return %c0_i32, %c0_i32_0 : i32, i32
  }
  func.func @transform_8(%arg0: i32) -> (i32, i32, i32) {
    %c0_i32 = arith.constant 0 : i32
    %c0_i32_0 = arith.constant 0 : i32
    %c0_i32_1 = arith.constant 0 : i32
    return %arg0, %c0_i32, %c0_i32_0 : i32, i32, i32
  }
}

</mosaic_0001>

<bundles_post_ra>
// kernel: block_forward.2
= control target key start
LH: loop header
LB: loop body
LE: loop exit
PB: predicated region body
PF: predicated region fallthrough
CT: control target
= control target key end

     0   :  { %s1084_s15 = smov 0   ;;  %s1221_s0 = inlined_call_operand.vmem [shape: f32[2,9,9,16], index: 0, kind: input, shape index: {}]   ;;  %s1222_s1 = inlined_call_operand.vmem [shape: f32[2,2,16,128], index: 1, kind: input, shape index: {}]   ;;  %s1223_s2 = inlined_call_operand.vmem [shape: f32[1,128], index: 2, kind: input, shape index: {}]   ;;  %s1224_s3 = inlined_call_operand.vmem [shape: f32[1,128], index: 3, kind: input, shape index: {}]   ;;  %s1225_s4 = inlined_call_operand.vmem [shape: f32[2,64,128], index: 4, kind: output, shape index: {}]  }
   0x1 LB: > { %s847_s16 = sadd.s32 4294967295, %s1057_s15   ;;  %p851_p0 = scmp.ge.s32.totalorder %s1057_s15, 1  ;;  %s1057_s15 = sphi %s1084_s15, %s14_s15  }
   0x2   : > { %p162_p1 = scmp.lt.s32.totalorder %s1057_s15, 3 }
   0x4   : > { %p163_p2 = pnand %p851_p0, %p162_p1 }
   0x5   : > { %v873_v0 = vld [vmem:[%s1222_s1 + $0x20] sm:$0xff] (!%p163_p2)  ;;  %v874_v1 = vld [vmem:[%s1222_s1 + $0x28] sm:$0xff] (!%p163_p2)  ;;  %v855_v2 = vld [vmem:[%s1222_s1 + $0x10] sm:$0xff] (!%p163_p2)  ;;  %p188_p3 = scmp.lt.s32.totalorder (!%p163_p2), %s847_s16, 1  ;;  %vm262_vm0 = vcmask (!%p163_p2), 130048   ;;  %vm234_vm1 = vcmask (!%p163_p2), 1046528  }
   0x6   : > { %166 = sbr.rel (%p163_p2) target bundleno = 273 (0x111), region = 36  ;;  %v1010_v3 = vpack.c.bf16 (!%p163_p2), %v874_v1, %v873_v0  ;;  %v856_v4 = vld [vmem:[%s1222_s1 + $0x18] sm:$0xff] (!%p163_p2)  ;;  %v216_v5 = vld [vmem:[%s1222_s1] sm:$0xff] (!%p163_p2)  ;;  %v217_v6 = vld [vmem:[%s1222_s1 + $0x8] sm:$0xff] (!%p163_p2) }
   0x7   : > { %v1002_v7 = vpack.c.bf16 (!%p163_p2), %v856_v4, %v855_v2  ;;  %v1006_v8 = vpack.c.bf16 (!%p163_p2), %v217_v6, %v216_v5  ;;  %v883_v9 = vld [vmem:[%s1222_s1 + $0x30] sm:$0xff] (!%p163_p2)  ;;  %v884_v10 = vld [vmem:[%s1222_s1 + $0x38] sm:$0xff] (!%p163_p2)  ;;  %v893_v60 = vld [vmem:[%s1223_s2] ss:$0 sm:$0xff] (!%p163_p2) }
   0x8   : > { %1011 = vmatprep.subr.bf16.mxu0 (!%p163_p2), %v1010_v3  ;;  %v1014_v11 = vpack.c.bf16 (!%p163_p2), %v884_v10, %v883_v9  ;;  %v894_v1 = vld [vmem:[%s1224_s3] ss:$0 sm:$0xff] (!%p163_p2) }
   0x9   : > { %1013 = vmatpush3.bf16.msra.mxu0 (!%p163_p2), %v1010_v3  ;;  %1003 = vmatprep.subr.bf16.mxu1 (!%p163_p2), %v1002_v7 }
   0xa   : > { %1005 = vmatpush3.bf16.msra.mxu1 (!%p163_p2), %v1002_v7  ;;  %1015 = vmatprep.subr.bf16.mxu0 (!%p163_p2), %v1014_v11 }
   0xb   : > { %1007 = vmatprep.subr.bf16.mxu1 (!%p163_p2), %v1006_v8 }
   0xd   : > { %s1227_s16 = smov (!%p188_p3, %s847_s16), 1 }
   0xe   : > { %s1042_s7 = smul.u32 144, %s1227_s16  ;;  %s897_s17 = sshll.u32 %s1227_s16, 6 }
   0xf   : > { %s1208_s20 = scalar_lea.vmem %s1225_s4, %s897_s17 }
  0x10   : > { %s1122_s10 = scalar_lea.vmem %s1221_s0, %s1042_s7 }
  0x11   : > { %v1125_v12 = vld [vmem:[%s1122_s10 + $0x10] sm:$0xff]  ;;  %v1128_v13 = vld [vmem:[%s1122_s10 + $0x20] sm:$0xff]  ;;  %v199_v16 = vld [vmem:[%s1122_s10 + $0x8] sm:$0x1] }
  0x12   : > { %v198_v14 = vld [vmem:[%s1122_s10] sm:$0xff]  ;;  %v238_v15 = vrot.slane %v1125_v12, 1  ;;  %974 = vmatprep.mubr.msk.f32.mxu0 %vm262_vm0, %v1125_v12  ;;  %v1136_v18 = vld [vmem:[%s1122_s10 + $0x30] sm:$0xff]  ;;  %v241_v19 = vrot.slane %v1128_v13, 1  ;;  %v236_v20 = vrot.slane %v199_v16, 1 }
  0x13   : > { %v235_v17 = vrot.slane %v198_v14, 1  ;;  %975 = vmatmul.mubr.msk.f32.vlgmr.msra.gmra.mrb[0].mxu0 %vm262_vm0, %v1128_v13  ;;  %v201_v21 = vld [vmem:[%s1122_s10 + $0x18] sm:$0x1]  ;;  %v244_v22 = vrot.slane %v1136_v18, 1  ;;  %v206_v24 = vld [vmem:[%s1122_s10 + $0x40] sm:$0xff]  ;;  %v208_v31 = vld [vmem:[%s1122_s10 + $0x50] sm:$0xff] }
  0x14   : > { %v239_v23 = vrot.slane %v201_v21, 1  ;;  %977 = vmatprep.mubr.msk.f32.mxu0 %vm262_vm0, %v1136_v18  ;;  %1017 = vmatpush3.bf16.msra.mxu0 %v1014_v11  ;;  %v203_v25 = vld [vmem:[%s1122_s10 + $0x28] sm:$0x1]  ;;  %v205_v26 = vld [vmem:[%s1122_s10 + $0x38] sm:$0x1]  ;;  %v247_v28 = vrot.slane %v206_v24, 1 }
  0x15   : > { %v237_v27 = vsel %vm234_vm1, %v235_v17, %v236_v20  ;;  %v242_v29 = vrot.slane %v203_v25, 1  ;;  %v245_v30 = vrot.slane %v205_v26, 1  ;;  %v207_v32 = vld [vmem:[%s1122_s10 + $0x48] sm:$0x1]  ;;  %v209_v35 = vld [vmem:[%s1122_s10 + $0x58] sm:$0x1] }
  0x16   : > { %942 = vmatprep.mubr.msk.f32.mxu1 %vm262_vm0, %v237_v27  ;;  %v240_v33 = vsel %vm234_vm1, %v238_v15, %v239_v23  ;;  %v248_v34 = vrot.slane %v207_v32, 1  ;;  %v211_v37 = vld [vmem:[%s1122_s10 + $0x68] sm:$0x1]  ;;  %v250_v39 = vrot.slane %v208_v31, 1  ;;  %v210_v40 = vld [vmem:[%s1122_s10 + $0x60] sm:$0xff]  ;;  %v251_v41 = vrot.slane %v209_v35, 1 }
  0x17   : > { %943 = vmatmul.mubr.msk.f32.vlgmr.msra.gmra.mrb[0].mxu1 %vm262_vm0, %v240_v33  ;;  %978 = vmatmul.mubr.msk.f32.gmra.mrb[2].mxu0 %vm262_vm0, %v206_v24  ;;  %v243_v36 = vsel %vm234_vm1, %v241_v19, %v242_v29  ;;  %v246_v38 = vsel %vm234_vm1, %v244_v22, %v245_v30  ;;  %v253_v42 = vrot.slane %v210_v40, 1  ;;  %v212_v44 = vld [vmem:[%s1122_s10 + $0x70] sm:$0xff]  ;;  %v254_v45 = vrot.slane %v211_v37, 1  ;;  %v213_v46 = vld [vmem:[%s1122_s10 + $0x78] sm:$0x1]  ;;  %v214_v49 = vld [vmem:[%s1122_s10 + $0x80] sm:$0xff] }
  0x18   : > { %1009 = vmatpush3.bf16.msra.mxu1 %v1006_v8  ;;  %945 = vmatprep.mubr.msk.f32.mxu1 %vm262_vm0, %v243_v36  ;;  %v249_v43 = vsel %vm234_vm1, %v247_v28, %v248_v34  ;;  %v252_v47 = vsel %vm234_vm1, %v250_v39, %v251_v41  ;;  %v256_v48 = vrot.slane %v212_v44, 1  ;;  %v257_v50 = vrot.slane %v213_v46, 1  ;;  %v215_v53 = vld [vmem:[%s1122_s10 + $0x88] sm:$0x1] }
  0x19   : > { %980 = vmatprep.mubr.msk.f32.mxu0 %vm262_vm0, %v208_v31  ;;  %v255_v51 = vsel %vm234_vm1, %v253_v42, %v254_v45  ;;  %v625_v54 = vrot.slane %v214_v49, 1  ;;  %v626_v55 = vrot.slane %v215_v53, 1 }
  0x1a   : > { %v258_v52 = vsel %vm234_vm1, %v256_v48, %v257_v50 }
  0x1b   : > { %946 = vmatmul.mubr.msk.f32.gmra.mrb[2].mxu1 %vm262_vm0, %v246_v38  ;;  %981 = vmatmul.mubr.msk.f32.gmra.mrb[4].mxu0 %vm262_vm0, %v210_v40  ;;  %v627_v56 = vsel %vm234_vm1, %v625_v54, %v626_v55 }
  0x1c   : > { %948 = vmatprep.mubr.msk.f32.mxu1 %vm262_vm0, %v249_v43  ;;  %983 = vmatprep.mubr.msk.f32.mxu0 %vm262_vm0, %v212_v44 }
  0x1f   : > { %949 = vmatmul.mubr.msk.f32.gmra.mrb[4].mxu1 %vm262_vm0, %v252_v47  ;;  %984 = vmatmul.mubr.msk.f32.gmra.mrb[6].mxu0 %vm262_vm0, %v214_v49 }
  0x20   : > { %951 = vmatprep.mubr.msk.f32.mxu1 %vm262_vm0, %v255_v51  ;;  %990 = vmatprep.mubr.msk.f32.mxu0 %vm262_vm0, %v240_v33 }
  0x23   : > { %952 = vmatmul.mubr.msk.f32.gmra.mrb[6].mxu1 %vm262_vm0, %v258_v52  ;;  %991 = vmatmul.mubr.msk.f32.vlgmr.msra.gmra.mrb[0].mxu0 %vm262_vm0, %v243_v36 }
  0x24   : > { %958 = vmatprep.mubr.msk.f32.mxu1 %vm262_vm0, %v198_v14  ;;  %993 = vmatprep.mubr.msk.f32.mxu0 %vm262_vm0, %v246_v38 }
  0x27   : > { %959 = vmatmul.mubr.msk.f32.vlgmr.msra.gmra.mrb[0].mxu1 %vm262_vm0, %v1125_v12  ;;  %994 = vmatmul.mubr.msk.f32.gmra.mrb[2].mxu0 %vm262_vm0, %v249_v43 }
  0x28   : > { %961 = vmatprep.mubr.msk.f32.mxu1 %vm262_vm0, %v1128_v13  ;;  %996 = vmatprep.mubr.msk.f32.mxu0 %vm262_vm0, %v252_v47 }
  0x2b   : > { %962 = vmatmul.mubr.msk.f32.gmra.mrb[2].mxu1 %vm262_vm0, %v1136_v18  ;;  %997 = vmatmul.mubr.msk.f32.gmra.mrb[4].mxu0 %vm262_vm0, %v255_v51 }
  0x2c   : > { %964 = vmatprep.mubr.msk.f32.mxu1 %vm262_vm0, %v206_v24  ;;  %999 = vmatprep.mubr.msk.f32.mxu0 %vm262_vm0, %v258_v52 }
  0x2f   : > { %965 = vmatmul.mubr.msk.f32.gmra.mrb[4].mxu1 %vm262_vm0, %v208_v31  ;;  %1000 = vmatmul.mubr.msk.f32.gmra.mrb[6].mxu0 %vm262_vm0, %v627_v56 }
  0x30   : > { %967 = vmatprep.mubr.msk.f32.mxu1 %vm262_vm0, %v210_v40 }
  0x33   : > { %968 = vmatmul.mubr.msk.f32.gmra.mrb[6].mxu1 %vm262_vm0, %v212_v44 }
  0xf6   : > { %v992_v57 = vpop.f32.mrb[0].mxu0 }
  0xf7   : > { %v699_v58 = vpop.f32.mrb[1].mxu0 }
  0xfa   : > { %v960_v59 = vpop.f32.mrb[0].mxu1  ;;  %v995_v61 = vpop.f32.mrb[2].mxu0 }
  0xfb   : > { %v1018_v62 = vadd.f32 %v992_v57, %v960_v59  ;;  %v466_v63 = vpop.f32.mrb[1].mxu1  ;;  %v709_v0 = vpop.f32.mrb[3].mxu0 }
  0xfc   : > { %v1019_v2 = vadd.f32 %v699_v58, %v466_v63 }
  0xfd   : > { %v754_v3 = vmul.f32 %v1018_v62, %v893_v60 }
  0xfe   : > { %v753_v4 = vmul.f32 %v1019_v2, %v893_v60  ;;  %v963_v5 = vpop.f32.mrb[2].mxu1  ;;  %v998_v6 = vpop.f32.mrb[4].mxu0 }
  0xff   : > { %v769_v7 = vadd.f32 %v894_v1, %v754_v3  ;;  %v1020_v8 = vadd.f32 %v995_v61, %v963_v5  ;;  %v476_v9 = vpop.f32.mrb[3].mxu1  ;;  %v719_v10 = vpop.f32.mrb[5].mxu0 }
 0x100   : > { %v768_v11 = vadd.f32 %v894_v1, %v753_v4  ;;  %v1021_v12 = vadd.f32 %v709_v0, %v476_v9 }
 0x101   : > { %v777_v13 = vmax.f32 %v769_v7, 0.0  ;;  %v756_v14 = vmul.f32 %v1020_v8, %v893_v60 }
 0x102   : > { %v776_v15 = vmax.f32 %v768_v11, 0.0  ;;  %v755_v16 = vmul.f32 %v1021_v12, %v893_v60  ;;  %v966_v17 = vpop.f32.mrb[4].mxu1  ;;  %v1001_v18 = vpop.f32.mrb[6].mxu0 }
 0x103   : > { %785 = vst [vmem:[%s1208_s20 + $0x8] sm:$0xff] %v777_v13  ;;  %v771_v19 = vadd.f32 %v894_v1, %v756_v14  ;;  %v1022_v20 = vadd.f32 %v998_v6, %v966_v17  ;;  %v486_v21 = vpop.f32.mrb[5].mxu1  ;;  %v729_v22 = vpop.f32.mrb[7].mxu0 }
 0x104   : > { %784 = vst [vmem:[%s1208_s20] sm:$0xff] %v776_v15  ;;  %v770_v23 = vadd.f32 %v894_v1, %v755_v16  ;;  %v1023_v24 = vadd.f32 %v719_v10, %v486_v21 }
 0x105   : > { %v779_v25 = vmax.f32 %v771_v19, 0.0  ;;  %v758_v26 = vmul.f32 %v1022_v20, %v893_v60 }
 0x106   : > { %v778_v27 = vmax.f32 %v770_v23, 0.0  ;;  %v757_v28 = vmul.f32 %v1023_v24, %v893_v60  ;;  %v969_v29 = vpop.f32.mrb[6].mxu1 }
 0x107   : > { %787 = vst [vmem:[%s1208_s20 + $0x18] sm:$0xff] %v779_v25  ;;  %v773_v30 = vadd.f32 %v894_v1, %v758_v26  ;;  %v1024_v31 = vadd.f32 %v1001_v18, %v969_v29  ;;  %v496_v32 = vpop.f32.mrb[7].mxu1 }
 0x108   : > { %786 = vst [vmem:[%s1208_s20 + $0x10] sm:$0xff] %v778_v27  ;;  %v772_v33 = vadd.f32 %v894_v1, %v757_v28  ;;  %v1025_v34 = vadd.f32 %v729_v22, %v496_v32 }
 0x109   : > { %v781_v35 = vmax.f32 %v773_v30, 0.0  ;;  %v760_v36 = vmul.f32 %v1024_v31, %v893_v60 }
 0x10a   : > { %v780_v37 = vmax.f32 %v772_v33, 0.0  ;;  %v759_v38 = vmul.f32 %v1025_v34, %v893_v60 }
 0x10b   : > { %789 = vst [vmem:[%s1208_s20 + $0x28] sm:$0xff] %v781_v35  ;;  %v775_v39 = vadd.f32 %v894_v1, %v760_v36 }
 0x10c   : > { %788 = vst [vmem:[%s1208_s20 + $0x20] sm:$0xff] %v780_v37  ;;  %v774_v40 = vadd.f32 %v894_v1, %v759_v38 }
 0x10d   : > { %v783_v41 = vmax.f32 %v775_v39, 0.0 }
 0x10e   : > { %v782_v42 = vmax.f32 %v774_v40, 0.0 }
 0x10f   : > { %791 = vst [vmem:[%s1208_s20 + $0x38] sm:$0xff] %v783_v41 }
 0x110   : > { %790 = vst [vmem:[%s1208_s20 + $0x30] sm:$0xff] %v782_v42 }
 0x111 PF: > { %s14_s15 = sadd.s32 1, %s1057_s15  }
 0x112   : > { %p11_p4 = scmp.ge.s32.totalorder %s14_s15, 4  }
 0x114   :  { %13 = sbr.rel (!%p11_p4) target bundleno = 1 (0x1), region = 69 }

// kernel: block_forward.3
= control target key start
LH: loop header
LB: loop body
LE: loop exit
PB: predicated region body
PF: predicated region fallthrough
CT: control target
= control target key end

     0   :  { %s3102_s27 = smov 0   ;;  %s3831_s0 = inlined_call_operand.vmem [shape: f32[2,10,10,128], index: 0, kind: input, shape index: {}]   ;;  %s3832_s1 = inlined_call_operand.vmem [shape: f32[3,3,128,128], index: 1, kind: input, shape index: {}]   ;;  %s3833_s2 = inlined_call_operand.vmem [shape: f32[1,128], index: 2, kind: input, shape index: {}]   ;;  %s3834_s3 = inlined_call_operand.vmem [shape: f32[1,128], index: 3, kind: input, shape index: {}]   ;;  %s3835_s4 = inlined_call_operand.vmem [shape: f32[2,64,16], index: 4, kind: input, shape index: {}]   ;;  %s3836_s5 = inlined_call_operand.vmem [shape: f32[1,1,16,128], index: 5, kind: input, shape index: {}]   ;;  %s3837_s6 = inlined_call_operand.vmem [shape: f32[1,128], index: 6, kind: input, shape index: {}]   ;;  %s3838_s7 = inlined_call_operand.vmem [shape: f32[1,128], index: 7, kind: input, shape index: {}]   ;;  %s3839_s8 = inlined_call_operand.vmem [shape: f32[2,64,128], index: 8, kind: output, shape index: {}]  }
   0x1 LB: > { %s1892_s28 = sadd.s32 4294967295, %s3055_s27   ;;  %p1896_p0 = scmp.ge.s32.totalorder %s3055_s27, 1  ;;  %s3055_s27 = sphi %s3102_s27, %s18_s27  }
   0x2   : > { %p272_p1 = scmp.lt.s32.totalorder %s3055_s27, 3 }
   0x4   : > { %p273_p2 = pnand %p1896_p0, %p272_p1 }
   0x5   : > { %v1902_v0 = vld [vmem:[%s3832_s1 + $0x80] sm:$0xff] (!%p273_p2)  ;;  %v1903_v1 = vld [vmem:[%s3832_s1 + $0x88] sm:$0xff] (!%p273_p2)  ;;  %p311_p3 = scmp.lt.s32.totalorder (!%p273_p2), %s1892_s28, 1  ;;  %v1904_v5 = vld [vmem:[%s3832_s1 + $0x90] sm:$0xff] (!%p273_p2)  ;;  %vm378_vm0 = vcmask (!%p273_p2), 1046528   ;;  %vm638_vm1 = vcmask (!%p273_p2), 1045504  }
   0x6   : > { %276 = sbr.rel (%p273_p2) target bundleno = 407 (0x197), region = 52  ;;  %v1950_v2 = vld [vmem:[%s3832_s1 + $0x200] sm:$0xff] (!%p273_p2)  ;;  %v2684_v3 = vpack.c.bf16 (!%p273_p2), %v1903_v1, %v1902_v0  ;;  %v1951_v4 = vld [vmem:[%s3832_s1 + $0x208] sm:$0xff] (!%p273_p2)  ;;  %v1905_v6 = vld [vmem:[%s3832_s1 + $0x98] sm:$0xff] (!%p273_p2)  ;;  %vm1611_vm2 = vcmask (!%p273_p2), 130048  }
   0x7   : > { %v2812_v7 = vpack.c.bf16 (!%p273_p2), %v1951_v4, %v1950_v2  ;;  %v2688_v8 = vpack.c.bf16 (!%p273_p2), %v1905_v6, %v1904_v5  ;;  %v1952_v9 = vld [vmem:[%s3832_s1 + $0x210] sm:$0xff] (!%p273_p2)  ;;  %v1953_v10 = vld [vmem:[%s3832_s1 + $0x218] sm:$0xff] (!%p273_p2)  ;;  %v1906_v11 = vld [vmem:[%s3832_s1 + $0xa0] sm:$0xff] (!%p273_p2) }
   0x8   : > { %2685 = vmatprep.subr.bf16.mxu1 (!%p273_p2), %v2684_v3  ;;  %v2816_v12 = vpack.c.bf16 (!%p273_p2), %v1953_v10, %v1952_v9  ;;  %v1907_v13 = vld [vmem:[%s3832_s1 + $0xa8] sm:$0xff] (!%p273_p2)  ;;  %v1954_v14 = vld [vmem:[%s3832_s1 + $0x220] sm:$0xff] (!%p273_p2)  ;;  %v1908_v18 = vld [vmem:[%s3832_s1 + $0xb0] sm:$0xff] (!%p273_p2) }
   0x9   : > { %v1955_v15 = vld [vmem:[%s3832_s1 + $0x228] sm:$0xff] (!%p273_p2)  ;;  %2813 = vmatprep.subr.bf16.mxu0 (!%p273_p2), %v2812_v7  ;;  %2687 = vmatpush3.bf16.msra.mxu1 (!%p273_p2), %v2684_v3  ;;  %v2692_v16 = vpack.c.bf16 (!%p273_p2), %v1907_v13, %v1906_v11  ;;  %v1909_v19 = vld [vmem:[%s3832_s1 + $0xb8] sm:$0xff] (!%p273_p2)  ;;  %v1956_v20 = vld [vmem:[%s3832_s1 + $0x230] sm:$0xff] (!%p273_p2) }
   0xa   : > { %2815 = vmatpush3.bf16.msra.mxu0 (!%p273_p2), %v2812_v7  ;;  %2689 = vmatprep.subr.bf16.mxu1 (!%p273_p2), %v2688_v8  ;;  %v2820_v17 = vpack.c.bf16 (!%p273_p2), %v1955_v15, %v1954_v14  ;;  %v1957_v21 = vld [vmem:[%s3832_s1 + $0x238] sm:$0xff] (!%p273_p2)  ;;  %v2696_v22 = vpack.c.bf16 (!%p273_p2), %v1909_v19, %v1908_v18  ;;  %v1910_v23 = vld [vmem:[%s3832_s1 + $0xc0] sm:$0xff] (!%p273_p2)  ;;  %v1911_v24 = vld [vmem:[%s3832_s1 + $0xc8] sm:$0xff] (!%p273_p2) }
   0xb   : > { %2817 = vmatprep.subr.bf16.mxu0 (!%p273_p2), %v2816_v12  ;;  %v2824_v25 = vpack.c.bf16 (!%p273_p2), %v1957_v21, %v1956_v20  ;;  %v1958_v27 = vld [vmem:[%s3832_s1 + $0x240] sm:$0xff] (!%p273_p2)  ;;  %v1959_v28 = vld [vmem:[%s3832_s1 + $0x248] sm:$0xff] (!%p273_p2)  ;;  %v2700_v31 = vpack.c.bf16 (!%p273_p2), %v1911_v24, %v1910_v23  ;;  %v1912_v40 = vld [vmem:[%s3832_s1 + $0xd0] sm:$0xff] (!%p273_p2) }
   0xc   : > { %v2828_v39 = vpack.c.bf16 (!%p273_p2), %v1959_v28, %v1958_v27  ;;  %v1913_v41 = vld [vmem:[%s3832_s1 + $0xd8] sm:$0xff] (!%p273_p2)  ;;  %v1960_v43 = vld [vmem:[%s3832_s1 + $0x250] sm:$0xff] (!%p273_p2)  ;;  %v1914_v49 = vld [vmem:[%s3832_s1 + $0xe0] sm:$0xff] (!%p273_p2) }
   0xd   : > { %s3841_s28 = smov (!%p311_p3, %s1892_s28), 1  ;;  %2691 = vmatpush3.bf16.msra.mxu1 %v2688_v8  ;;  %v1961_v44 = vld [vmem:[%s3832_s1 + $0x258] sm:$0xff]  ;;  %v2704_v46 = vpack.c.bf16 %v1913_v41, %v1912_v40  ;;  %v1915_v50 = vld [vmem:[%s3832_s1 + $0xe8] sm:$0xff]  ;;  %v1962_v51 = vld [vmem:[%s3832_s1 + $0x260] sm:$0xff] }
   0xe   : > { %s3040_s11 = smul.u32 160, %s3841_s28  ;;  %2819 = vmatpush3.bf16.msra.mxu0 %v2816_v12  ;;  %2693 = vmatprep.subr.bf16.mxu1 %v2692_v16  ;;  %v2832_v48 = vpack.c.bf16 %v1961_v44, %v1960_v43  ;;  %v1963_v52 = vld [vmem:[%s3832_s1 + $0x268] sm:$0xff]  ;;  %v2708_v53 = vpack.c.bf16 %v1915_v50, %v1914_v49  ;;  %v1916_v55 = vld [vmem:[%s3832_s1 + $0xf0] sm:$0xff]  ;;  %v1917_v56 = vld [vmem:[%s3832_s1 + $0xf8] sm:$0xff] }
   0xf   : > { %2821 = vmatprep.subr.bf16.mxu0 %v2820_v17  ;;  %v2836_v54 = vpack.c.bf16 %v1963_v52, %v1962_v51  ;;  %v1964_v57 = vld [vmem:[%s3832_s1 + $0x270] sm:$0xff]  ;;  %v1965_v58 = vld [vmem:[%s3832_s1 + $0x278] sm:$0xff]  ;;  %v2712_v59 = vpack.c.bf16 %v1917_v56, %v1916_v55  ;;  %v346_v60 = vld [vmem:[%s3832_s1] sm:$0xff] }
  0x10   : > { %s3164_s22 = scalar_lea.vmem %s3831_s0, %s3040_s11  ;;  %v2840_v61 = vpack.c.bf16 %v1965_v58, %v1964_v57  ;;  %v347_v62 = vld [vmem:[%s3832_s1 + $0x8] sm:$0xff]  ;;  %v1966_v1 = vld [vmem:[%s3832_s1 + $0x280] sm:$0xff]  ;;  %v348_v6 = vld [vmem:[%s3832_s1 + $0x10] sm:$0xff]  ;;  %s2044_s11 = sshll.u32 %s3841_s28, 6 }
  0x11   : > { %v3173_v26 = vld [vmem:[%s3164_s22] sm:$0xff]  ;;  %v327_v29 = vld [vmem:[%s3164_s22 + $0x8] sm:$0x3]  ;;  %2695 = vmatpush3.bf16.msra.mxu1 %v2692_v16  ;;  %v3184_v33 = vld [vmem:[%s3164_s22 + $0x10] sm:$0xff]  ;;  %v2716_v3 = vpack.c.bf16 %v347_v62, %v346_v60  ;;  %s3745_s14 = scalar_lea.vmem %s3835_s4, %s2044_s11  ;;  %s3818_s23 = scalar_lea.vmem %s3839_s8, %s2044_s11 }
  0x12   : > { %v379_v30 = vrot.slane %v3173_v26, 1  ;;  %v380_v32 = vrot.slane %v327_v29, 1  ;;  %v3187_v34 = vld [vmem:[%s3164_s22 + $0x18] sm:$0x3]  ;;  %2823 = vmatpush3.bf16.msra.mxu0 %v2820_v17  ;;  %2697 = vmatprep.subr.bf16.mxu1 %v2696_v22  ;;  %v382_v35 = vrot.slane %v3184_v33, 1  ;;  %v639_v37 = vrot.slane %v3173_v26, 2 }
  0x13   : > { %v383_v36 = vrot.slane %v3187_v34, 1  ;;  %v640_v38 = vrot.slane %v327_v29, 2  ;;  %2825 = vmatprep.subr.bf16.mxu0 %v2824_v25  ;;  %v3243_v63 = vld [vmem:[%s3164_s22 + $0x20] sm:$0xff]  ;;  %v3246_v0 = vld [vmem:[%s3164_s22 + $0x28] sm:$0x3]  ;;  %v3260_v7 = vld [vmem:[%s3164_s22 + $0x30] sm:$0xff] }
  0x14   : > { %v381_v42 = vsel %vm378_vm0, %v379_v30, %v380_v32  ;;  %v1967_v2 = vld [vmem:[%s3832_s1 + $0x288] sm:$0xff]  ;;  %v385_v4 = vrot.slane %v3243_v63, 1  ;;  %v386_v5 = vrot.slane %v3246_v0, 1  ;;  %v3263_v8 = vld [vmem:[%s3164_s22 + $0x38] sm:$0x3]  ;;  %v3269_v11 = vld [vmem:[%s3164_s22 + $0x40] sm:$0xff] }
  0x15   : > { %2304 = vmatprep.mubr.f32.mxu1 %v381_v42  ;;  %v3206_v45 = vsel %vm378_vm0, %v382_v35, %v383_v36  ;;  %2699 = vmatpush3.bf16.msra.mxu1 %v2696_v22  ;;  %v3210_v47 = vsel %vm638_vm1, %v639_v37, %v640_v38  ;;  %v2844_v9 = vpack.c.bf16 %v1967_v2, %v1966_v1  ;;  %v349_v10 = vld [vmem:[%s3832_s1 + $0x18] sm:$0xff]  ;;  %v3272_v12 = vld [vmem:[%s3164_s22 + $0x48] sm:$0x3]  ;;  %v1968_v13 = vld [vmem:[%s3832_s1 + $0x290] sm:$0xff]  ;;  %v388_v15 = vrot.slane %v3260_v7, 1 }
  0x16   : > { %2480 = vmatprep.mubr.f32.mxu0 %v3206_v45  ;;  %2827 = vmatpush3.bf16.msra.mxu0 %v2824_v25  ;;  %v1969_v14 = vld [vmem:[%s3832_s1 + $0x298] sm:$0xff]  ;;  %v389_v16 = vrot.slane %v3263_v8, 1  ;;  %v3283_v17 = vsel %vm378_vm0, %v385_v4, %v386_v5  ;;  %v2720_v18 = vpack.c.bf16 %v349_v10, %v348_v6  ;;  %v350_v19 = vld [vmem:[%s3832_s1 + $0x20] sm:$0xff]  ;;  %v391_v20 = vrot.slane %v3269_v11, 1  ;;  %v3291_v22 = vld [vmem:[%s3164_s22 + $0x50] sm:$0xff] }
  0x17   : > { %2701 = vmatprep.subr.bf16.mxu1 %v2700_v31  ;;  %2829 = vmatprep.subr.bf16.mxu0 %v2828_v39  ;;  %v392_v21 = vrot.slane %v3272_v12, 1  ;;  %v3294_v23 = vld [vmem:[%s3164_s22 + $0x58] sm:$0x3]  ;;  %v2848_v24 = vpack.c.bf16 %v1969_v14, %v1968_v13  ;;  %v351_v25 = vld [vmem:[%s3832_s1 + $0x28] sm:$0xff]  ;;  %v3300_v27 = vld [vmem:[%s3164_s22 + $0x60] sm:$0xff]  ;;  %v394_v32 = vrot.slane %v3291_v22, 1 }
  0x18   : > { %v3303_v28 = vld [vmem:[%s3164_s22 + $0x68] sm:$0x3]  ;;  %v1970_v29 = vld [vmem:[%s3832_s1 + $0x2a0] sm:$0xff]  ;;  %v395_v35 = vrot.slane %v3294_v23, 1  ;;  %v2724_v36 = vpack.c.bf16 %v351_v25, %v350_v19  ;;  %v352_v37 = vld [vmem:[%s3832_s1 + $0x30] sm:$0xff]  ;;  %v642_v1 = vrot.slane %v3184_v33, 2 }
  0x19   : > { %2703 = vmatpush3.bf16.msra.mxu1 %v2700_v31  ;;  %v1971_v30 = vld [vmem:[%s3832_s1 + $0x2a8] sm:$0xff]  ;;  %v3314_v31 = vsel %vm378_vm0, %v388_v15, %v389_v16  ;;  %v3322_v38 = vsel %vm378_vm0, %v391_v20, %v392_v21  ;;  %v398_v40 = vrot.slane %v3303_v28, 1  ;;  %v3327_v41 = vld [vmem:[%s3164_s22 + $0x70] sm:$0xff]  ;;  %v3330_v42 = vld [vmem:[%s3164_s22 + $0x78] sm:$0x3]  ;;  %v643_v2 = vrot.slane %v3187_v34, 2 }
  0x1a   : > { %2831 = vmatpush3.bf16.msra.mxu0 %v2828_v39  ;;  %2705 = vmatprep.subr.bf16.mxu1 %v2704_v46  ;;  %v397_v39 = vrot.slane %v3300_v27, 1  ;;  %v2852_v43 = vpack.c.bf16 %v1971_v30, %v1970_v29  ;;  %v353_v44 = vld [vmem:[%s3832_s1 + $0x38] sm:$0xff]  ;;  %v3352_v50 = vsel %vm378_vm0, %v394_v32, %v395_v35  ;;  %v400_v51 = vrot.slane %v3327_v41, 1  ;;  %v354_v58 = vld [vmem:[%s3832_s1 + $0x40] sm:$0xff]  ;;  %v356_v6 = vld [vmem:[%s3832_s1 + $0x50] sm:$0xff] }
  0x1b   : > { %2833 = vmatprep.subr.bf16.mxu0 %v2832_v48  ;;  %v1973_v49 = vld [vmem:[%s3832_s1 + $0x2b8] sm:$0xff]  ;;  %v401_v52 = vrot.slane %v3330_v42, 1  ;;  %v1974_v60 = vld [vmem:[%s3832_s1 + $0x2c0] sm:$0xff]  ;;  %v1976_v34 = vld [vmem:[%s3832_s1 + $0x2d0] sm:$0xff]  ;;  %v3402_v13 = vsel %vm638_vm1, %v642_v1, %v643_v2  ;;  %v648_v2 = vrot.slane %v3260_v7, 2 }
  0x1c   : > { %v1977_v10 = vld [vmem:[%s3832_s1 + $0x2d8] sm:$0xff]  ;;  %v358_v16 = vld [vmem:[%s3832_s1 + $0x60] sm:$0xff]  ;;  %v1979_v20 = vld [vmem:[%s3832_s1 + $0x2e8] sm:$0xff] }
  0x1d   : > { %2707 = vmatpush3.bf16.msra.mxu1 %v2704_v46  ;;  %v3340_v46 = vld [vmem:[%s3164_s22 + $0x88] sm:$0x3]  ;;  %v3378_v62 = vsel %vm378_vm0, %v400_v51, %v401_v52  ;;  %v2864_v15 = vpack.c.bf16 %v1977_v10, %v1976_v34  ;;  %v1978_v19 = vld [vmem:[%s3832_s1 + $0x2e0] sm:$0xff]  ;;  %v3419_v21 = vld [vmem:[%s3164_s22 + $0x90] sm:$0xff]  ;;  %v652_v34 = vrot.slane %v3272_v12, 2 }
  0x1e   : > { %2835 = vmatpush3.bf16.msra.mxu0 %v2832_v48  ;;  %2709 = vmatprep.subr.bf16.mxu1 %v2708_v53  ;;  %v1972_v48 = vld [vmem:[%s3832_s1 + $0x2b0] sm:$0xff]  ;;  %v934_v56 = vrot.slane %v3340_v46, 1  ;;  %v1333_v25 = vrot.slane %v3419_v21, 1  ;;  %v2868_v29 = vpack.c.bf16 %v1979_v20, %v1978_v19  ;;  %v361_v32 = vld [vmem:[%s3832_s1 + $0x78] sm:$0xff]  ;;  %v1918_v51 = vld [vmem:[%s3832_s1 + $0x100] sm:$0xff]  ;;  %v655_v19 = vrot.slane %v3294_v23, 2 }
  0x1f   : > { %2837 = vmatprep.subr.bf16.mxu0 %v2836_v54  ;;  %v2856_v57 = vpack.c.bf16 %v1973_v49, %v1972_v48  ;;  %v360_v30 = vld [vmem:[%s3832_s1 + $0x70] sm:$0xff]  ;;  %v345_v35 = vld [vmem:[%s3164_s22 + $0x98] sm:$0x3]  ;;  %v1919_v52 = vld [vmem:[%s3832_s1 + $0x108] sm:$0xff] }
  0x20   : > { %v1984_v1 = vld [vmem:[%s3832_s1 + $0x310] sm:$0xff]  ;;  %v1987_v12 = vld [vmem:[%s3832_s1 + $0x328] sm:$0xff]  ;;  %v1925_v23 = vld [vmem:[%s3832_s1 + $0x138] sm:$0xff] }
  0x21   : > { %2711 = vmatpush3.bf16.msra.mxu1 %v2708_v53  ;;  %v2728_v53 = vpack.c.bf16 %v353_v44, %v352_v37  ;;  %v1981_v37 = vld [vmem:[%s3832_s1 + $0x2f8] sm:$0xff] }
  0x22   : > { %2839 = vmatpush3.bf16.msra.mxu0 %v2836_v54  ;;  %2713 = vmatprep.subr.bf16.mxu1 %v2712_v59  ;;  %v3357_v54 = vsel %vm378_vm0, %v397_v39, %v398_v40  ;;  %v1334_v39 = vrot.slane %v345_v35, 1  ;;  %v1468_v40 = vrot.slane %v345_v35, 2 }
  0x23   : > { %2841 = vmatprep.subr.bf16.mxu0 %v2840_v61 }
  0x24   : > { %v3437_v44 = vsel %vm378_vm0, %v1333_v25, %v1334_v39  ;;  %v657_v25 = vrot.slane %v3300_v27, 2 }
  0x25   : > { %2715 = vmatpush3.bf16.msra.mxu1 %v2712_v59  ;;  %v355_v59 = vld [vmem:[%s3832_s1 + $0x48] sm:$0xff] }
  0x26   : > { %2843 = vmatpush3.bf16.msra.mxu0 %v2840_v61  ;;  %2717 = vmatprep.subr.bf16.mxu1 %v2716_v3  ;;  %v1975_v61 = vld [vmem:[%s3832_s1 + $0x2c8] sm:$0xff] }
  0x27   : > { %2845 = vmatprep.subr.bf16.mxu0 %v2844_v9  ;;  %v2860_v5 = vpack.c.bf16 %v1975_v61, %v1974_v60  ;;  %v1920_v60 = vld [vmem:[%s3832_s1 + $0x110] sm:$0xff]  ;;  %v1921_v61 = vld [vmem:[%s3832_s1 + $0x118] sm:$0xff] }
  0x28   : > { %2305 = vmatmul.mubr.f32.vlgmr.msra.gmra.mrb[0].mxu1 %v3206_v45  ;;  %v3337_v45 = vld [vmem:[%s3164_s22 + $0x80] sm:$0xff] }
  0x29   : > { %2719 = vmatpush3.bf16.msra.mxu1 %v2716_v3  ;;  %2481 = vmatmul.mubr.f32.vlgmr.msra.gmra.mrb[0].mxu0 %v3283_v17  ;;  %v933_v55 = vrot.slane %v3337_v45, 1  ;;  %v2732_v3 = vpack.c.bf16 %v355_v59, %v354_v58  ;;  %v645_v58 = vrot.slane %v3243_v63, 2 }
  0x2a   : > { %2847 = vmatpush3.bf16.msra.mxu0 %v2844_v9  ;;  %2721 = vmatprep.subr.bf16.mxu1 %v2720_v18  ;;  %v357_v9 = vld [vmem:[%s3832_s1 + $0x58] sm:$0xff] }
  0x2b   : > { %2849 = vmatprep.subr.bf16.mxu0 %v2848_v24  ;;  %2307 = vmatprep.mubr.f32.mxu1 %v3283_v17  ;;  %v3383_v4 = vsel %vm378_vm0, %v933_v55, %v934_v56  ;;  %v2736_v14 = vpack.c.bf16 %v357_v9, %v356_v6  ;;  %v1983_v55 = vld [vmem:[%s3832_s1 + $0x308] sm:$0xff]  ;;  %v646_v56 = vrot.slane %v3246_v0, 2  ;;  %v1985_v0 = vld [vmem:[%s3832_s1 + $0x318] sm:$0xff]  ;;  %v2752_v6 = vpack.c.bf16 %v1921_v61, %v1920_v60  ;;  %v1992_v61 = vld [vmem:[%s3832_s1 + $0x350] sm:$0xff] }
  0x2c   : > { %2483 = vmatprep.mubr.f32.mxu0 %v3314_v31  ;;  %2308 = vmatmul.mubr.f32.gmra.mrb[2].mxu1 %v3314_v31  ;;  %v651_v9 = vrot.slane %v3269_v11, 2  ;;  %v2880_v10 = vpack.c.bf16 %v1985_v0, %v1984_v1  ;;  %v1929_v60 = vld [vmem:[%s3832_s1 + $0x158] sm:$0xff] }
  0x2d   : > { %2723 = vmatpush3.bf16.msra.mxu1 %v2720_v18  ;;  %2484 = vmatmul.mubr.f32.gmra.mrb[2].mxu0 %v3322_v38  ;;  %v359_v18 = vld [vmem:[%s3832_s1 + $0x68] sm:$0xff]  ;;  %v1993_v1 = vld [vmem:[%s3832_s1 + $0x358] sm:$0xff] }
  0x2e   : > { %2851 = vmatpush3.bf16.msra.mxu0 %v2848_v24  ;;  %2725 = vmatprep.subr.bf16.mxu1 %v2724_v36  ;;  %v2740_v24 = vpack.c.bf16 %v359_v18, %v358_v16  ;;  %v654_v18 = vrot.slane %v3291_v22, 2 }
  0x2f   : > { %2853 = vmatprep.subr.bf16.mxu0 %v2852_v43  ;;  %2310 = vmatprep.mubr.f32.mxu1 %v3322_v38 }
  0x30   : > { %2486 = vmatprep.mubr.f32.mxu0 %v3352_v50  ;;  %2311 = vmatmul.mubr.f32.gmra.mrb[4].mxu1 %v3352_v50  ;;  %v3516_v35 = vsel %vm638_vm1, %v654_v18, %v655_v19 }
  0x31   : > { %2727 = vmatpush3.bf16.msra.mxu1 %v2724_v36  ;;  %2487 = vmatmul.mubr.f32.gmra.mrb[4].mxu0 %v3357_v54  ;;  %v1980_v36 = vld [vmem:[%s3832_s1 + $0x2f0] sm:$0xff] }
  0x32   : > { %2855 = vmatpush3.bf16.msra.mxu0 %v2852_v43  ;;  %2729 = vmatprep.subr.bf16.mxu1 %v2728_v53  ;;  %v2744_v43 = vpack.c.bf16 %v361_v32, %v360_v30  ;;  %v2872_v49 = vpack.c.bf16 %v1981_v37, %v1980_v36  ;;  %v1924_v30 = vld [vmem:[%s3832_s1 + $0x130] sm:$0xff]  ;;  %v660_v36 = vrot.slane %v3327_v41, 2  ;;  %v661_v37 = vrot.slane %v3330_v42, 2  ;;  %v1927_v42 = vld [vmem:[%s3832_s1 + $0x148] sm:$0xff] }
  0x33   : > { %2857 = vmatprep.subr.bf16.mxu0 %v2856_v57  ;;  %2313 = vmatprep.mubr.f32.mxu1 %v3357_v54  ;;  %v1988_v32 = vld [vmem:[%s3832_s1 + $0x330] sm:$0xff]  ;;  %v2760_v39 = vpack.c.bf16 %v1925_v23, %v1924_v30 }
  0x34   : > { %2489 = vmatprep.mubr.f32.mxu0 %v3378_v62  ;;  %2314 = vmatmul.mubr.f32.gmra.mrb[6].mxu1 %v3378_v62 }
  0x35   : > { %2731 = vmatpush3.bf16.msra.mxu1 %v2728_v53  ;;  %2490 = vmatmul.mubr.f32.gmra.mrb[6].mxu0 %v3383_v4  ;;  %v1982_v53 = vld [vmem:[%s3832_s1 + $0x300] sm:$0xff] }
  0x36   : > { %2859 = vmatpush3.bf16.msra.mxu0 %v2856_v57  ;;  %2733 = vmatprep.subr.bf16.mxu1 %v2732_v3  ;;  %v2748_v57 = vpack.c.bf16 %v1919_v52, %v1918_v51  ;;  %v2876_v59 = vpack.c.bf16 %v1983_v55, %v1982_v53  ;;  %v1926_v52 = vld [vmem:[%s3832_s1 + $0x140] sm:$0xff]  ;;  %v3542_v55 = vsel %vm638_vm1, %v660_v36, %v661_v37  ;;  %v2000_v36 = vld [vmem:[%s3832_s1 + $0x390] sm:$0xff]  ;;  %v2001_v37 = vld [vmem:[%s3832_s1 + $0x398] sm:$0xff] }
  0x37   : > { %2861 = vmatprep.subr.bf16.mxu0 %v2860_v5  ;;  %2348 = vmatprep.mubr.f32.mxu1 %v3173_v26  ;;  %v1467_v26 = vrot.slane %v3419_v21, 2  ;;  %v1990_v53 = vld [vmem:[%s3832_s1 + $0x340] sm:$0xff] }
  0x38   : > { %2524 = vmatprep.mubr.f32.mxu0 %v3402_v13 }
  0x39   : > { %2735 = vmatpush3.bf16.msra.mxu1 %v2732_v3  ;;  %v3440_v48 = vsel %vm638_vm1, %v1467_v26, %v1468_v40  ;;  %v649_v3 = vrot.slane %v3263_v8, 2  ;;  %v1923_v8 = vld [vmem:[%s3832_s1 + $0x128] sm:$0xff]  ;;  %v658_v26 = vrot.slane %v3303_v28, 2  ;;  %v1989_v28 = vld [vmem:[%s3832_s1 + $0x338] sm:$0xff] }
  0x3a   : > { %2863 = vmatpush3.bf16.msra.mxu0 %v2860_v5  ;;  %2737 = vmatprep.subr.bf16.mxu1 %v2736_v14  ;;  %v3471_v5 = vsel %vm638_vm1, %v645_v58, %v646_v56  ;;  %v2888_v51 = vpack.c.bf16 %v1989_v28, %v1988_v32  ;;  %v2764_v56 = vpack.c.bf16 %v1927_v42, %v1926_v52  ;;  %v1936_v32 = vld [vmem:[%s3832_s1 + $0x190] sm:$0xff]  ;;  %v1937_v28 = vld [vmem:[%s3832_s1 + $0x198] sm:$0xff]  ;;  %v2002_v52 = vld [vmem:[%s3832_s1 + $0x3a0] sm:$0xff] }
  0x3b   : > { %2865 = vmatprep.subr.bf16.mxu0 %v2864_v15  ;;  %v3490_v16 = vsel %vm638_vm1, %v648_v2, %v649_v3  ;;  %v3521_v40 = vsel %vm638_vm1, %v657_v25, %v658_v26  ;;  %v2896_v2 = vpack.c.bf16 %v1993_v1, %v1992_v61  ;;  %v1930_v3 = vld [vmem:[%s3832_s1 + $0x160] sm:$0xff]  ;;  %v1935_v25 = vld [vmem:[%s3832_s1 + $0x188] sm:$0xff] }
  0x3c   : > { %v1998_v26 = vld [vmem:[%s3832_s1 + $0x380] sm:$0xff]  ;;  %v2003_v42 = vld [vmem:[%s3832_s1 + $0x3a8] sm:$0xff] }
  0x3d   : > { %2739 = vmatpush3.bf16.msra.mxu1 %v2736_v14  ;;  %v1922_v14 = vld [vmem:[%s3832_s1 + $0x120] sm:$0xff] }
  0x3e   : > { %2867 = vmatpush3.bf16.msra.mxu0 %v2864_v15  ;;  %2741 = vmatprep.subr.bf16.mxu1 %v2740_v24  ;;  %v1986_v15 = vld [vmem:[%s3832_s1 + $0x320] sm:$0xff]  ;;  %v2756_v20 = vpack.c.bf16 %v1923_v8, %v1922_v14  ;;  %v1933_v8 = vld [vmem:[%s3832_s1 + $0x178] sm:$0xff] }
  0x3f   : > { %2869 = vmatprep.subr.bf16.mxu0 %v2868_v29  ;;  %v1942_v1 = vld [vmem:[%s3832_s1 + $0x1c0] sm:$0xff] }
  0x41   : > { %2743 = vmatpush3.bf16.msra.mxu1 %v2740_v24  ;;  %v3495_v24 = vsel %vm638_vm1, %v651_v9, %v652_v34  ;;  %v1994_v9 = vld [vmem:[%s3832_s1 + $0x360] sm:$0xff]  ;;  %v1995_v34 = vld [vmem:[%s3832_s1 + $0x368] sm:$0xff] }
  0x42   : > { %2871 = vmatpush3.bf16.msra.mxu0 %v2868_v29  ;;  %2745 = vmatprep.subr.bf16.mxu1 %v2744_v43  ;;  %v2884_v29 = vpack.c.bf16 %v1987_v12, %v1986_v15  ;;  %v2900_v14 = vpack.c.bf16 %v1995_v34, %v1994_v9  ;;  %v1996_v15 = vld [vmem:[%s3832_s1 + $0x370] sm:$0xff]  ;;  %v1997_v12 = vld [vmem:[%s3832_s1 + $0x378] sm:$0xff] }
  0x43   : > { %2873 = vmatprep.subr.bf16.mxu0 %v2872_v49  ;;  %v2904_v19 = vpack.c.bf16 %v1997_v12, %v1996_v15  ;;  %v1944_v34 = vld [vmem:[%s3832_s1 + $0x1d0] sm:$0xff]  ;;  %v1946_v12 = vld [vmem:[%s3832_s1 + $0x1e0] sm:$0xff] }
  0x45   : > { %2747 = vmatpush3.bf16.msra.mxu1 %v2744_v43  ;;  %v1067_v43 = vrot.slane %v3337_v45, 2 }
  0x46   : > { %2875 = vmatpush3.bf16.msra.mxu0 %v2872_v49  ;;  %2749 = vmatprep.subr.bf16.mxu1 %v2748_v57  ;;  %v1068_v49 = vrot.slane %v3340_v46, 2  ;;  %v1991_v46 = vld [vmem:[%s3832_s1 + $0x348] sm:$0xff] }
  0x47   : > { %2877 = vmatprep.subr.bf16.mxu0 %v2876_v59  ;;  %v2892_v58 = vpack.c.bf16 %v1991_v46, %v1990_v53  ;;  %v2916_v46 = vpack.c.bf16 %v2003_v42, %v2002_v52  ;;  %v2018_v42 = vld [vmem:[%s3832_s1 + $0x420] sm:$0xff] }
  0x48   : > { %2349 = vmatmul.mubr.f32.vlgmr.msra.gmra.mrb[0].mxu1 %v3184_v33 }
  0x49   : > { %2751 = vmatpush3.bf16.msra.mxu1 %v2748_v57  ;;  %2525 = vmatmul.mubr.f32.vlgmr.msra.gmra.mrb[0].mxu0 %v3471_v5  ;;  %v3545_v57 = vsel %vm638_vm1, %v1067_v43, %v1068_v49  ;;  %v2912_v43 = vpack.c.bf16 %v2001_v37, %v2000_v36  ;;  %v1938_v49 = vld [vmem:[%s3832_s1 + $0x1a0] sm:$0xff]  ;;  %v2015_v37 = vld [vmem:[%s3832_s1 + $0x408] sm:$0xff] }
  0x4a   : > { %2879 = vmatpush3.bf16.msra.mxu0 %v2876_v59  ;;  %2753 = vmatprep.subr.bf16.mxu1 %v2752_v6  ;;  %v1928_v59 = vld [vmem:[%s3832_s1 + $0x150] sm:$0xff]  ;;  %v2014_v36 = vld [vmem:[%s3832_s1 + $0x400] sm:$0xff] }
  0x4b   : > { %2881 = vmatprep.subr.bf16.mxu0 %v2880_v10  ;;  %2351 = vmatprep.mubr.f32.mxu1 %v3243_v63  ;;  %v2768_v0 = vpack.c.bf16 %v1929_v60, %v1928_v59  ;;  %v2005_v59 = vld [vmem:[%s3832_s1 + $0x3b8] sm:$0xff] }
  0x4c   : > { %2527 = vmatprep.mubr.f32.mxu0 %v3490_v16  ;;  %2352 = vmatmul.mubr.f32.gmra.mrb[2].mxu1 %v3260_v7 }
  0x4d   : > { %2755 = vmatpush3.bf16.msra.mxu1 %v2752_v6  ;;  %2528 = vmatmul.mubr.f32.gmra.mrb[2].mxu0 %v3495_v24  ;;  %v1931_v6 = vld [vmem:[%s3832_s1 + $0x168] sm:$0xff] }
  0x4e   : > { %2883 = vmatpush3.bf16.msra.mxu0 %v2880_v10  ;;  %2757 = vmatprep.subr.bf16.mxu1 %v2756_v20  ;;  %v2772_v10 = vpack.c.bf16 %v1931_v6, %v1930_v3  ;;  %v2007_v3 = vld [vmem:[%s3832_s1 + $0x3c8] sm:$0xff] }
  0x4f   : > { %2885 = vmatprep.subr.bf16.mxu0 %v2884_v29  ;;  %2354 = vmatprep.mubr.f32.mxu1 %v3269_v11 }
  0x50   : > { %2530 = vmatprep.mubr.f32.mxu0 %v3516_v35  ;;  %2355 = vmatmul.mubr.f32.gmra.mrb[4].mxu1 %v3291_v22 }
  0x51   : > { %2759 = vmatpush3.bf16.msra.mxu1 %v2756_v20  ;;  %2531 = vmatmul.mubr.f32.gmra.mrb[4].mxu0 %v3521_v40  ;;  %v1934_v20 = vld [vmem:[%s3832_s1 + $0x180] sm:$0xff] }
  0x52   : > { %2887 = vmatpush3.bf16.msra.mxu0 %v2884_v29  ;;  %2761 = vmatprep.subr.bf16.mxu1 %v2760_v39  ;;  %v1999_v29 = vld [vmem:[%s3832_s1 + $0x388] sm:$0xff]  ;;  %v2780_v30 = vpack.c.bf16 %v1935_v25, %v1934_v20 }
  0x53   : > { %2889 = vmatprep.subr.bf16.mxu0 %v2888_v51  ;;  %2357 = vmatprep.mubr.f32.mxu1 %v3300_v27  ;;  %v2908_v23 = vpack.c.bf16 %v1999_v29, %v1998_v26  ;;  %v1949_v26 = vld [vmem:[%s3832_s1 + $0x1f8] sm:$0xff]  ;;  %v2012_v29 = vld [vmem:[%s3832_s1 + $0x3f0] sm:$0xff] }
  0x54   : > { %2533 = vmatprep.mubr.f32.mxu0 %v3542_v55  ;;  %2358 = vmatmul.mubr.f32.gmra.mrb[6].mxu1 %v3327_v41 }
  0x55   : > { %2763 = vmatpush3.bf16.msra.mxu1 %v2760_v39  ;;  %2534 = vmatmul.mubr.f32.gmra.mrb[6].mxu0 %v3545_v57  ;;  %v2784_v39 = vpack.c.bf16 %v1937_v28, %v1936_v32  ;;  %v1609_v32 = vld [vmem:[%s3836_s5] sm:$0xff]  ;;  %v1610_v28 = vld [vmem:[%s3836_s5 + $0x8] sm:$0xff] }
  0x56   : > { %2891 = vmatpush3.bf16.msra.mxu0 %v2888_v51  ;;  %2765 = vmatprep.subr.bf16.mxu1 %v2764_v56  ;;  %v1939_v51 = vld [vmem:[%s3832_s1 + $0x1a8] sm:$0xff] }
  0x57   : > { %2893 = vmatprep.subr.bf16.mxu0 %v2892_v58  ;;  %2392 = vmatprep.mubr.f32.mxu1 %v3210_v47  ;;  %v1932_v47 = vld [vmem:[%s3832_s1 + $0x170] sm:$0xff]  ;;  %v2788_v53 = vpack.c.bf16 %v1939_v51, %v1938_v49  ;;  %v2017_v51 = vld [vmem:[%s3832_s1 + $0x418] sm:$0xff] }
  0x58   : > { %2568 = vmatprep.mubr.f32.mxu0 %v3243_v63  ;;  %v2776_v18 = vpack.c.bf16 %v1933_v8, %v1932_v47  ;;  %v2009_v47 = vld [vmem:[%s3832_s1 + $0x3d8] sm:$0xff]  ;;  %v2016_v49 = vld [vmem:[%s3832_s1 + $0x410] sm:$0xff] }
  0x59   : > { %2767 = vmatpush3.bf16.msra.mxu1 %v2764_v56  ;;  %v1941_v56 = vld [vmem:[%s3832_s1 + $0x1b8] sm:$0xff]  ;;  %v2944_v52 = vpack.c.bf16 %v2017_v51, %v2016_v49 }
  0x5a   : > { %2895 = vmatpush3.bf16.msra.mxu0 %v2892_v58  ;;  %2769 = vmatprep.subr.bf16.mxu1 %v2768_v0  ;;  %v2004_v58 = vld [vmem:[%s3832_s1 + $0x3b0] sm:$0xff] }
  0x5b   : > { %2897 = vmatprep.subr.bf16.mxu0 %v2896_v2  ;;  %v2920_v61 = vpack.c.bf16 %v2005_v59, %v2004_v58  ;;  %v2028_v58 = vld [vmem:[%s3832_s1 + $0x470] sm:$0xff]  ;;  %v2029_v59 = vld [vmem:[%s3832_s1 + $0x478] sm:$0xff] }
  0x5d   : > { %2771 = vmatpush3.bf16.msra.mxu1 %v2768_v0  ;;  %v1943_v0 = vld [vmem:[%s3832_s1 + $0x1c8] sm:$0xff] }
  0x5e   : > { %2899 = vmatpush3.bf16.msra.mxu0 %v2896_v2  ;;  %2773 = vmatprep.subr.bf16.mxu1 %v2772_v10  ;;  %v2006_v2 = vld [vmem:[%s3832_s1 + $0x3c0] sm:$0xff]  ;;  %v2796_v6 = vpack.c.bf16 %v1943_v0, %v1942_v1  ;;  %v2968_v1 = vpack.c.bf16 %v2029_v59, %v2028_v58  ;;  %v1608_v0 = vld [vmem:[%s3745_s14 + $0x38] sm:$0xff] }
  0x5f   : > { %2901 = vmatprep.subr.bf16.mxu0 %v2900_v14  ;;  %v2924_v9 = vpack.c.bf16 %v2007_v3, %v2006_v2 }
  0x61   : > { %2775 = vmatpush3.bf16.msra.mxu1 %v2772_v10  ;;  %v1945_v10 = vld [vmem:[%s3832_s1 + $0x1d8] sm:$0xff] }
  0x62   : > { %2903 = vmatpush3.bf16.msra.mxu0 %v2900_v14  ;;  %2777 = vmatprep.subr.bf16.mxu1 %v2776_v18  ;;  %v2008_v14 = vld [vmem:[%s3832_s1 + $0x3d0] sm:$0xff]  ;;  %v2800_v8 = vpack.c.bf16 %v1945_v10, %v1944_v34 }
  0x63   : > { %2905 = vmatprep.subr.bf16.mxu0 %v2904_v19  ;;  %v2928_v15 = vpack.c.bf16 %v2009_v47, %v2008_v14 }
  0x65   : > { %2779 = vmatpush3.bf16.msra.mxu1 %v2776_v18  ;;  %v1947_v18 = vld [vmem:[%s3832_s1 + $0x1e8] sm:$0xff] }
  0x66   : > { %2907 = vmatpush3.bf16.msra.mxu0 %v2904_v19  ;;  %2781 = vmatprep.subr.bf16.mxu1 %v2780_v30  ;;  %v2010_v19 = vld [vmem:[%s3832_s1 + $0x3e0] sm:$0xff]  ;;  %v2804_v20 = vpack.c.bf16 %v1947_v18, %v1946_v12 }
  0x67   : > { %2909 = vmatprep.subr.bf16.mxu0 %v2908_v23 }
  0x68   : > { %2393 = vmatmul.mubr.f32.vlgmr.msra.gmra.mrb[0].mxu1 %v3402_v13  ;;  %v1940_v13 = vld [vmem:[%s3832_s1 + $0x1b0] sm:$0xff] }
  0x69   : > { %2783 = vmatpush3.bf16.msra.mxu1 %v2780_v30  ;;  %2569 = vmatmul.mubr.f32.vlgmr.msra.gmra.mrb[0].mxu0 %v3260_v7  ;;  %v2792_v60 = vpack.c.bf16 %v1941_v56, %v1940_v13  ;;  %v2021_v13 = vld [vmem:[%s3832_s1 + $0x438] sm:$0xff] }
  0x6a   : > { %2911 = vmatpush3.bf16.msra.mxu0 %v2908_v23  ;;  %2785 = vmatprep.subr.bf16.mxu1 %v2784_v39 }
  0x6b   : > { %2913 = vmatprep.subr.bf16.mxu0 %v2912_v43  ;;  %2395 = vmatprep.mubr.f32.mxu1 %v3471_v5 }
  0x6c   : > { %2396 = vmatmul.mubr.f32.gmra.mrb[2].mxu1 %v3490_v16  ;;  %2571 = vmatprep.mubr.f32.mxu0 %v3269_v11 }
  0x6d   : > { %2787 = vmatpush3.bf16.msra.mxu1 %v2784_v39  ;;  %2572 = vmatmul.mubr.f32.gmra.mrb[2].mxu0 %v3291_v22  ;;  %v2972_v39 = vpack.c.bf16 %v1610_v28, %v1609_v32 }
  0x6e   : > { %2915 = vmatpush3.bf16.msra.mxu0 %v2912_v43  ;;  %2789 = vmatprep.subr.bf16.mxu1 %v2788_v53  ;;  %v2940_v43 = vpack.c.bf16 %v2015_v37, %v2014_v36  ;;  %v2041_v36 = vld [vmem:[%s3838_s7] ss:$0 sm:$0xff] }
  0x6f   : > { %2917 = vmatprep.subr.bf16.mxu0 %v2916_v46  ;;  %2398 = vmatprep.mubr.f32.mxu1 %v3495_v24 }
  0x70   : > { %2399 = vmatmul.mubr.f32.gmra.mrb[4].mxu1 %v3516_v35  ;;  %2574 = vmatprep.mubr.f32.mxu0 %v3300_v27 }
  0x71   : > { %2791 = vmatpush3.bf16.msra.mxu1 %v2788_v53  ;;  %2575 = vmatmul.mubr.f32.gmra.mrb[4].mxu0 %v3327_v41  ;;  %v2019_v53 = vld [vmem:[%s3832_s1 + $0x428] sm:$0xff] }
  0x72   : > { %2919 = vmatpush3.bf16.msra.mxu0 %v2916_v46  ;;  %2793 = vmatprep.subr.bf16.mxu1 %v2792_v60  ;;  %v2948_v46 = vpack.c.bf16 %v2019_v53, %v2018_v42 }
  0x73   : > { %2921 = vmatprep.subr.bf16.mxu0 %v2920_v61  ;;  %2401 = vmatprep.mubr.f32.mxu1 %v3521_v40 }
  0x74   : > { %2402 = vmatmul.mubr.f32.gmra.mrb[6].mxu1 %v3542_v55  ;;  %2577 = vmatprep.mubr.f32.mxu0 %v3337_v45 }
  0x75   : > { %2795 = vmatpush3.bf16.msra.mxu1 %v2792_v60  ;;  %2578 = vmatmul.mubr.f32.gmra.mrb[6].mxu0 %v3419_v21  ;;  %v2011_v21 = vld [vmem:[%s3832_s1 + $0x3e8] sm:$0xff] }
  0x76   : > { %2923 = vmatpush3.bf16.msra.mxu0 %v2920_v61  ;;  %2797 = vmatprep.subr.bf16.mxu1 %v2796_v6  ;;  %v2932_v25 = vpack.c.bf16 %v2011_v21, %v2010_v19  ;;  %v1606_v60 = vld [vmem:[%s3745_s14 + $0x28] sm:$0xff]  ;;  %v1607_v61 = vld [vmem:[%s3745_s14 + $0x30] sm:$0xff] }
  0x77   : > { %2925 = vmatprep.subr.bf16.mxu0 %v2924_v9  ;;  %2436 = vmatprep.mubr.f32.mxu1 %v3184_v33  ;;  %v1948_v33 = vld [vmem:[%s3832_s1 + $0x1f0] sm:$0xff] }
  0x78   : > { %2612 = vmatprep.mubr.f32.mxu0 %v3283_v17  ;;  %v2013_v17 = vld [vmem:[%s3832_s1 + $0x3f8] sm:$0xff]  ;;  %v2808_v30 = vpack.c.bf16 %v1949_v26, %v1948_v33 }
  0x79   : > { %2799 = vmatpush3.bf16.msra.mxu1 %v2796_v6  ;;  %v2936_v23 = vpack.c.bf16 %v2013_v17, %v2012_v29 }
  0x7a   : > { %2927 = vmatpush3.bf16.msra.mxu0 %v2924_v9  ;;  %2801 = vmatprep.subr.bf16.mxu1 %v2800_v8 }
  0x7b   : > { %2929 = vmatprep.subr.bf16.mxu0 %v2928_v15 }
  0x7d   : > { %2803 = vmatpush3.bf16.msra.mxu1 %v2800_v8 }
  0x7e   : > { %2931 = vmatpush3.bf16.msra.mxu0 %v2928_v15  ;;  %2805 = vmatprep.subr.bf16.mxu1 %v2804_v20 }
  0x7f   : > { %2933 = vmatprep.subr.bf16.mxu0 %v2932_v25 }
  0x81   : > { %2807 = vmatpush3.bf16.msra.mxu1 %v2804_v20 }
  0x82   : > { %2935 = vmatpush3.bf16.msra.mxu0 %v2932_v25  ;;  %2809 = vmatprep.subr.bf16.mxu1 %v2808_v30  ;;  %v2039_v25 = vld [vmem:[%s3834_s3] ss:$0 sm:$0xff] }
  0x83   : > { %2937 = vmatprep.subr.bf16.mxu0 %v2936_v23 }
  0x85   : > { %2811 = vmatpush3.bf16.msra.mxu1 %v2808_v30 }
  0x86   : > { %2939 = vmatpush3.bf16.msra.mxu0 %v2936_v23  ;;  %2973 = vmatprep.subr.bf16.mxu1 %v2972_v39 }
  0x87   : > { %2941 = vmatprep.subr.bf16.mxu0 %v2940_v43 }
  0x88   : > { %2437 = vmatmul.mubr.f32.vlgmr.msra.gmra.mrb[0].mxu1 %v3243_v63  ;;  %v2020_v63 = vld [vmem:[%s3832_s1 + $0x430] sm:$0xff] }
  0x89   : > { %2613 = vmatmul.mubr.f32.vlgmr.msra.gmra.mrb[0].mxu0 %v3314_v31  ;;  %2439 = vmatprep.mubr.f32.mxu1 %v3260_v7  ;;  %v2952_v7 = vpack.c.bf16 %v2021_v13, %v2020_v63  ;;  %v1601_v31 = vld [vmem:[%s3745_s14] sm:$0xff] }
  0x8a   : > { %2943 = vmatpush3.bf16.msra.mxu0 %v2940_v43  ;;  %2615 = vmatprep.mubr.f32.mxu0 %v3322_v38  ;;  %v2024_v38 = vld [vmem:[%s3832_s1 + $0x450] sm:$0xff] }
  0x8b   : > { %2945 = vmatprep.subr.bf16.mxu0 %v2944_v52  ;;  %2975 = vmatpush3.bf16.msra.mxu1 %v2972_v39 }
  0x8c   : > { %2440 = vmatmul.mubr.f32.gmra.mrb[2].mxu1 %v3269_v11  ;;  %v2022_v11 = vld [vmem:[%s3832_s1 + $0x440] sm:$0xff] }
  0x8d   : > { %2442 = vmatprep.mubr.f32.mxu1 %v3291_v22  ;;  %2616 = vmatmul.mubr.f32.gmra.mrb[2].mxu0 %v3352_v50  ;;  %v2023_v22 = vld [vmem:[%s3832_s1 + $0x448] sm:$0xff] }
  0x8e   : > { %2947 = vmatpush3.bf16.msra.mxu0 %v2944_v52  ;;  %2618 = vmatprep.mubr.f32.mxu0 %v3357_v54  ;;  %v1602_v50 = vld [vmem:[%s3745_s14 + $0x8] sm:$0xff]  ;;  %v1603_v54 = vld [vmem:[%s3745_s14 + $0x10] sm:$0xff] }
  0x8f   : > { %2949 = vmatprep.subr.bf16.mxu0 %v2948_v46 }
  0x90   : > { %2443 = vmatmul.mubr.f32.gmra.mrb[4].mxu1 %v3300_v27  ;;  %v2956_v27 = vpack.c.bf16 %v2023_v22, %v2022_v11 }
  0x91   : > { %2445 = vmatprep.mubr.f32.mxu1 %v3327_v41  ;;  %2619 = vmatmul.mubr.f32.gmra.mrb[4].mxu0 %v3378_v62  ;;  %v2025_v41 = vld [vmem:[%s3832_s1 + $0x458] sm:$0xff]  ;;  %v2026_v62 = vld [vmem:[%s3832_s1 + $0x460] sm:$0xff] }
  0x92   : > { %2951 = vmatpush3.bf16.msra.mxu0 %v2948_v46  ;;  %2621 = vmatprep.mubr.f32.mxu0 %v3383_v4  ;;  %v2027_v4 = vld [vmem:[%s3832_s1 + $0x468] sm:$0xff] }
  0x93   : > { %2953 = vmatprep.subr.bf16.mxu0 %v2952_v7  ;;  %v2964_v56 = vpack.c.bf16 %v2027_v4, %v2026_v62 }
  0x94   : > { %2446 = vmatmul.mubr.f32.gmra.mrb[6].mxu1 %v3337_v45  ;;  %v2960_v45 = vpack.c.bf16 %v2025_v41, %v2024_v38 }
  0x95   : > { %2622 = vmatmul.mubr.f32.gmra.mrb[6].mxu0 %v3437_v44  ;;  %2672 = vmatprep.mubr.msk.f32.mxu1 %vm1611_vm2, %v1601_v31  ;;  %v1604_v44 = vld [vmem:[%s3745_s14 + $0x18] sm:$0xff] }
  0x96   : > { %2955 = vmatpush3.bf16.msra.mxu0 %v2952_v7  ;;  %2656 = vmatprep.mubr.f32.mxu0 %v3471_v5  ;;  %v1605_v5 = vld [vmem:[%s3745_s14 + $0x20] sm:$0xff] }
  0x97   : > { %2957 = vmatprep.subr.bf16.mxu0 %v2956_v27 }
  0x98   : > { %2673 = vmatmul.mubr.msk.f32.vlgmr.msra.gmra.mrb[8].mxu1 %vm1611_vm2, %v1602_v50 }
  0x99   : > { %2675 = vmatprep.mubr.msk.f32.mxu1 %vm1611_vm2, %v1603_v54 }
  0x9a   : > { %2959 = vmatpush3.bf16.msra.mxu0 %v2956_v27 }
  0x9b   : > { %2961 = vmatprep.subr.bf16.mxu0 %v2960_v45 }
  0x9c   : > { %2676 = vmatmul.mubr.msk.f32.gmra.mrb[10].mxu1 %vm1611_vm2, %v1604_v44 }
  0x9d   : > { %2678 = vmatprep.mubr.msk.f32.mxu1 %vm1611_vm2, %v1605_v5 }
  0x9e   : > { %2963 = vmatpush3.bf16.msra.mxu0 %v2960_v45 }
  0x9f   : > { %2965 = vmatprep.subr.bf16.mxu0 %v2964_v56 }
  0xa0   : > { %2679 = vmatmul.mubr.msk.f32.gmra.mrb[12].mxu1 %vm1611_vm2, %v1606_v60 }
  0xa1   : > { %2681 = vmatprep.mubr.msk.f32.mxu1 %vm1611_vm2, %v1607_v61 }
  0xa2   : > { %2967 = vmatpush3.bf16.msra.mxu0 %v2964_v56 }
  0xa3   : > { %2969 = vmatprep.subr.bf16.mxu0 %v2968_v1 }
  0xa4   : > { %2682 = vmatmul.mubr.msk.f32.gmra.mrb[14].mxu1 %vm1611_vm2, %v1608_v0 }
  0xa6   : > { %2971 = vmatpush3.bf16.msra.mxu0 %v2968_v1 }
  0xa9   : > { %2657 = vmatmul.mubr.f32.vlgmr.msra.gmra.mrb[0].mxu0 %v3490_v16 }
  0xaa   : > { %2659 = vmatprep.mubr.f32.mxu0 %v3495_v24 }
  0xad   : > { %2660 = vmatmul.mubr.f32.gmra.mrb[2].mxu0 %v3516_v35 }
  0xae   : > { %2662 = vmatprep.mubr.f32.mxu0 %v3521_v40 }
  0xb1   : > { %2663 = vmatmul.mubr.f32.gmra.mrb[4].mxu0 %v3542_v55 }
  0xb2   : > { %2665 = vmatprep.mubr.f32.mxu0 %v3545_v57  ;;  %v2040_v57 = vld [vmem:[%s3837_s6] ss:$0 sm:$0xff] }
  0xb5   : > { %2666 = vmatmul.mubr.f32.gmra.mrb[6].mxu0 %v3440_v48  ;;  %v2038_v48 = vld [vmem:[%s3833_s2] ss:$0 sm:$0xff] }
 0x15b   : > { %v2438_v2 = vpop.f32.mrb[0].mxu1 }
 0x15c   : > { %v884_v3 = vpop.f32.mrb[1].mxu1 }
 0x15f   : > { %v2441_v6 = vpop.f32.mrb[2].mxu1 }
 0x160   : > { %v894_v9 = vpop.f32.mrb[3].mxu1 }
 0x163   : > { %v2444_v34 = vpop.f32.mrb[4].mxu1 }
 0x164   : > { %v904_v10 = vpop.f32.mrb[5].mxu1 }
 0x167   : > { %v2447_v14 = vpop.f32.mrb[6].mxu1 }
 0x168   : > { %v914_v16 = vpop.f32.mrb[7].mxu1 }
 0x16b   : > { %v2674_v47 = vpop.f32.mrb[8].mxu1 }
 0x16c   : > { %v1702_v24 = vpop.f32.mrb[9].mxu1  ;;  %v1779_v26 = vmul.f32 %v2674_v47, %v2040_v57 }
 0x16d   : > { %v1778_v30 = vmul.f32 %v2040_v57, %v1702_v24 }
 0x16f   : > { %v2677_v8 = vpop.f32.mrb[10].mxu1 }
 0x170   : > { %v1712_v35 = vpop.f32.mrb[11].mxu1  ;;  %v1781_v51 = vmul.f32 %v2677_v8, %v2040_v57 }
 0x171   : > { %v1780_v46 = vmul.f32 %v2040_v57, %v1712_v35 }
 0x173   : > { %v2680_v15 = vpop.f32.mrb[12].mxu1 }
 0x174   : > { %v1722_v40 = vpop.f32.mrb[13].mxu1  ;;  %v1783_v54 = vmul.f32 %v2680_v15, %v2040_v57 }
 0x175   : > { %v1782_v5 = vmul.f32 %v2040_v57, %v1722_v40 }
 0x177   : > { %v2683_v12 = vpop.f32.mrb[14].mxu1 }
 0x178   : > { %v1732_v55 = vpop.f32.mrb[15].mxu1 }
 0x179   : > { %v1784_v24 = vmul.f32 %v2040_v57, %v1732_v55 }
 0x17c   : > { %v2658_v18 = vpop.f32.mrb[0].mxu0 }
 0x17d   : > { %v2976_v19 = vadd.f32 %v2658_v18, %v2438_v2  ;;  %v1554_v21 = vpop.f32.mrb[1].mxu0 }
 0x17e   : > { %v2977_v20 = vadd.f32 %v1554_v21, %v884_v3 }
 0x17f   : > { %v1749_v33 = vmul.f32 %v2976_v19, %v2038_v48 }
 0x180   : > { %v1748_v29 = vmul.f32 %v2977_v20, %v2038_v48  ;;  %v2661_v17 = vpop.f32.mrb[2].mxu0 }
 0x181   : > { %v1764_v23 = vadd.f32 %v2039_v25, %v1749_v33  ;;  %v2978_v32 = vadd.f32 %v2661_v17, %v2441_v6  ;;  %v1564_v28 = vpop.f32.mrb[3].mxu0 }
 0x182   : > { %v1763_v37 = vadd.f32 %v2039_v25, %v1748_v29  ;;  %v2979_v39 = vadd.f32 %v1564_v28, %v894_v9  ;;  %v1785_v9 = vmul.f32 %v2683_v12, %v2040_v57 }
 0x183   : > { %v1787_v43 = vadd.f32 %v1779_v26, %v1764_v23  ;;  %v1751_v49 = vmul.f32 %v2978_v32, %v2038_v48 }
 0x184   : > { %v1786_v52 = vadd.f32 %v1778_v30, %v1763_v37  ;;  %v1750_v42 = vmul.f32 %v2979_v39, %v2038_v48  ;;  %v2664_v53 = vpop.f32.mrb[4].mxu0 }
 0x185   : > { %v1802_v63 = vadd.f32 %v2041_v36, %v1787_v43  ;;  %v1766_v13 = vadd.f32 %v2039_v25, %v1751_v49  ;;  %v2980_v7 = vadd.f32 %v2664_v53, %v2444_v34  ;;  %v1574_v11 = vpop.f32.mrb[5].mxu0 }
 0x186   : > { %v1801_v22 = vadd.f32 %v2041_v36, %v1786_v52  ;;  %v1765_v31 = vadd.f32 %v2039_v25, %v1750_v42  ;;  %v2981_v27 = vadd.f32 %v1574_v11, %v904_v10 }
 0x187   : > { %v1810_v38 = vmax.f32 %v1802_v63, 0.0  ;;  %v1789_v41 = vadd.f32 %v1781_v51, %v1766_v13  ;;  %v1753_v50 = vmul.f32 %v2980_v7, %v2038_v48 }
 0x188   : > { %v1809_v45 = vmax.f32 %v1801_v22, 0.0  ;;  %v1788_v62 = vadd.f32 %v1780_v46, %v1765_v31  ;;  %v1752_v4 = vmul.f32 %v2981_v27, %v2038_v48  ;;  %v2667_v44 = vpop.f32.mrb[6].mxu0 }
 0x189   : > { %1818 = vst [vmem:[%s3818_s23 + $0x8] sm:$0xff] %v1810_v38  ;;  %v1804_v56 = vadd.f32 %v2041_v36, %v1789_v41  ;;  %v1768_v58 = vadd.f32 %v2039_v25, %v1753_v50  ;;  %v2982_v59 = vadd.f32 %v2667_v44, %v2447_v14  ;;  %v1584_v60 = vpop.f32.mrb[7].mxu0 }
 0x18a   : > { %1817 = vst [vmem:[%s3818_s23] sm:$0xff] %v1809_v45  ;;  %v1803_v61 = vadd.f32 %v2041_v36, %v1788_v62  ;;  %v1767_v1 = vadd.f32 %v2039_v25, %v1752_v4  ;;  %v2983_v0 = vadd.f32 %v1584_v60, %v914_v16 }
 0x18b   : > { %v1812_v2 = vmax.f32 %v1804_v56, 0.0  ;;  %v1791_v3 = vadd.f32 %v1783_v54, %v1768_v58  ;;  %v1755_v6 = vmul.f32 %v2982_v59, %v2038_v48 }
 0x18c   : > { %v1811_v34 = vmax.f32 %v1803_v61, 0.0  ;;  %v1790_v10 = vadd.f32 %v1782_v5, %v1767_v1  ;;  %v1754_v47 = vmul.f32 %v2983_v0, %v2038_v48 }
 0x18d   : > { %1820 = vst [vmem:[%s3818_s23 + $0x18] sm:$0xff] %v1812_v2  ;;  %v1806_v8 = vadd.f32 %v2041_v36, %v1791_v3  ;;  %v1770_v14 = vadd.f32 %v2039_v25, %v1755_v6 }
 0x18e   : > { %1819 = vst [vmem:[%s3818_s23 + $0x10] sm:$0xff] %v1811_v34  ;;  %v1805_v35 = vadd.f32 %v2041_v36, %v1790_v10  ;;  %v1769_v15 = vadd.f32 %v2039_v25, %v1754_v47 }
 0x18f   : > { %v1814_v40 = vmax.f32 %v1806_v8, 0.0  ;;  %v1793_v16 = vadd.f32 %v1785_v9, %v1770_v14 }
 0x190   : > { %v1813_v18 = vmax.f32 %v1805_v35, 0.0  ;;  %v1792_v19 = vadd.f32 %v1784_v24, %v1769_v15 }
 0x191   : > { %1822 = vst [vmem:[%s3818_s23 + $0x28] sm:$0xff] %v1814_v40  ;;  %v1808_v21 = vadd.f32 %v2041_v36, %v1793_v16 }
 0x192   : > { %1821 = vst [vmem:[%s3818_s23 + $0x20] sm:$0xff] %v1813_v18  ;;  %v1807_v12 = vadd.f32 %v2041_v36, %v1792_v19 }
 0x193   : > { %v1816_v20 = vmax.f32 %v1808_v21, 0.0 }
 0x194   : > { %v1815_v33 = vmax.f32 %v1807_v12, 0.0 }
 0x195   : > { %1824 = vst [vmem:[%s3818_s23 + $0x38] sm:$0xff] %v1816_v20 }
 0x196   : > { %1823 = vst [vmem:[%s3818_s23 + $0x30] sm:$0xff] %v1815_v33 }
 0x197 PF: > { %s18_s27 = sadd.s32 1, %s3055_s27  }
 0x198   : > { %p15_p4 = scmp.ge.s32.totalorder %s18_s27, 4  }
 0x19a   :  { %17 = sbr.rel (!%p15_p4) target bundleno = 1 (0x1), region = 93 }

</bundles_post_ra>
